<compile_context>
chip_gen: v5e
topology: v5e:2x2
jax: 0.10.0
libtpu: 0.0.40
codegen_flags: <defaults>
</compile_context>

<pallas_src>
import functools

import numpy as np
import jax
import jax.numpy as jnp
from jax.experimental import pallas as pl
from jax.experimental.pallas import tpu as pltpu


# --------------------------- CharCNN kernel ----------------------------------
def charcnn_kernel(ce_ref, w_ref, b_ref, out_ref, *, emb_dim, kernel_width):
    # ce_ref : [tile_tok, Lc*E] bf16  flattened char embeddings (lane-dense, no im2col copy)
    # w_ref  : [K*E, Cpad]      bf16  conv filters flattened, channels zero-padded to 128
    # b_ref  : [1, Cpad]        f32
    # out_ref: [tile_tok, Cpad] f32   max over positions of ReLU(conv)
    n_pos = ce_ref.shape[1] // emb_dim - kernel_width + 1
    w = w_ref[...]
    b = b_ref[...]
    mx = None
    for p in range(n_pos):                       # static, small trip count (Lc - K + 1)
        win = ce_ref[:, p * emb_dim:(p + kernel_width) * emb_dim]
        y = jnp.maximum(jnp.dot(win, w, preferred_element_type=jnp.float32) + b, 0.0)
        mx = y if mx is None else jnp.maximum(mx, y)
    out_ref[...] = mx


def charcnn(ce2d, w_pad, b_pad, *, emb_dim, kernel_width):
    n_tok, lce = ce2d.shape
    ke, c_pad = w_pad.shape
    # Token tile: a divisor of n_tok that is a multiple of 8 and <= 1024, so tiles plus
    # double buffering stay far below the v7x 64 MiB VMEM budget at realistic counts.
    tile = n_tok
    for cand in (1024, 512, 256, 128, 64, 32, 16, 8):
        if n_tok % cand == 0:
            tile = cand
            break
    grid = (n_tok // tile,)
    kern = functools.partial(charcnn_kernel, emb_dim=emb_dim, kernel_width=kernel_width)
    return pl.pallas_call(
        kern,
        out_shape=jax.ShapeDtypeStruct((n_tok, c_pad), jnp.float32),
        grid=grid,
        in_specs=[pl.BlockSpec((tile, lce), lambda i: (i, 0)),
                  pl.BlockSpec((ke, c_pad), lambda i: (0, 0)),
                  pl.BlockSpec((1, c_pad), lambda i: (0, 0))],
        out_specs=pl.BlockSpec((tile, c_pad), lambda i: (i, 0)),
        compiler_params=pltpu.CompilerParams(dimension_semantics=("parallel",)),
    )(ce2d, w_pad, b_pad)


# ---------------- fused bidirectional LSTM (projection + recurrence) ----------------
def bilstm_kernel(x_ref, wih_ref, whh_ref, b_ref, out_ref, gin_ref):
    # x_ref  : [T*N, Din] bf16  time-major rows (token t, sequence n) = row t*N + n
    # wih_ref: [Din, 8H]  bf16  fused fwd|bwd input weights, gate-interleaved columns
    #                           [i_f,i_b,f_f,f_b,g_f,g_b,o_f,o_b]; sigmoid cols pre-scaled 0.5
    # whh_ref: [2H, 8H]   bf16  block-diagonal fused recurrent weights (same column layout)
    # b_ref  : [1, 8H]    f32   fused bias (sigmoid cols pre-scaled 0.5)
    # out_ref: [T, N, 2H] f32/bf16  [..., :H] = fwd hidden, [..., H:] = bwd hidden
    # gin_ref: [T, N, 8H] f32 scratch  gate inputs, bwd columns stored time-reversed
    T, N, H2 = out_ref.shape
    H = H2 // 2
    G = wih_ref.shape[1]                                   # 8H

    lane = jax.lax.broadcasted_iota(jnp.int32, (N, G), 1)
    fwd_lane = (lane % H2) < H                             # fwd columns of each gate block
    g_lane = (lane >= 2 * H2) & (lane < 3 * H2)            # cell-candidate (tanh) gate block
    fwd_half = jax.lax.broadcasted_iota(jnp.int32, (N, H2), 1) < H

    # ---- prologue: fused input projection for BOTH directions (one 256-wide matmul) ----
    proj = jnp.dot(x_ref[...], wih_ref[...], preferred_element_type=jnp.float32) + b_ref[...]
    # One-time layout pass (off the recurrence critical path): scatter the projection
    # into the scratch with the backward gate columns reversed in time, so the serial
    # loop below reads gin_ref[s] exactly once per step.
    for s in range(T):                                     # TODO(synk): fori_loop for long T
        gin_ref[s] = jnp.where(fwd_lane,
                               proj[s * N:(s + 1) * N],
                               proj[(T - 1 - s) * N:(T - s) * N])

    whh = whh_ref[...]

    # ---- fused fwd/bwd recurrence: h / c hold [fwd | bwd] state side by side ----
    def step(s, carry):
        h, c = carry
        gates = gin_ref[s] + jnp.dot(h.astype(jnp.bfloat16), whh,
                                     preferred_element_type=jnp.float32)
        t = jnp.tanh(gates)                                # single EUP pass over all 8H lanes
        act = jnp.where(g_lane, t, 0.5 * t + 0.5)          # sigmoid lanes were pre-scaled 0.5
        i_g = act[:, 0:H2]
        f_g = act[:, H2:2 * H2]
        g_g = act[:, 2 * H2:3 * H2]
        o_g = act[:, 3 * H2:4 * H2]
        c = f_g * c + i_g * g_g
        h = o_g * jnp.tanh(c)
        out_ref[s] = h.astype(out_ref.dtype)               # one store/step; bwd half time-reversed
        return h, c

    init = (jnp.zeros((N, H2), jnp.float32), jnp.zeros((N, H2), jnp.float32))
    jax.lax.fori_loop(0, T, step, init)

    # ---- epilogue: un-reverse the backward half with contiguous pairwise swaps ----
    for s in range(T // 2):                                # TODO(synk): fori_loop for long T
        lo = out_ref[s]
        hi = out_ref[T - 1 - s]
        out_ref[s] = jnp.where(fwd_half, lo, hi)
        out_ref[T - 1 - s] = jnp.where(fwd_half, hi, lo)


def bilstm_layer(x, wih, whh, b, *, out_dtype):
    """x: [T, N, Din] (time-major) -> [T, N, 2H] with fwd|bwd hidden halves fused.

    N=2 here underfills sublanes / the MXU LHS (recurrence is latency-bound at this
    batch); pad/pack to >= 8 sequences for real workloads.
    """
    T, N, Din = x.shape
    G = wih.shape[1]                     # 8H
    H = whh.shape[0] // 2
    x2d = x.reshape(T * N, Din).astype(jnp.bfloat16)    # row-major reshape: free in XLA
    return pl.pallas_call(
        bilstm_kernel,
        out_shape=jax.ShapeDtypeStruct((T, N, 2 * H), out_dtype),
        in_specs=[pl.BlockSpec(memory_space=pltpu.MemorySpace.VMEM)] * 4,
        out_specs=pl.BlockSpec(memory_space=pltpu.MemorySpace.VMEM),
        scratch_shapes=[pltpu.VMEM((T, N, G), jnp.float32)],
        # raise the scoped VMEM limit (v5e defaults to 16 MiB); 32 MiB is safe everywhere
        compiler_params=pltpu.CompilerParams(vmem_limit_bytes=32 * 1024 * 1024),
    )(x2d, wih, whh, b)


# -------------------------- host-side weight prep -----------------------------
def fuse_bilstm_params(fwd, bwd):
    """Fuse per-direction (Wih, Whh, b) into gate-interleaved 8H-wide matrices.

    Sigmoid-gate (i, f, o) columns are pre-scaled by 0.5 so the kernel only needs one
    tanh pass:  sigmoid(z) = 0.5 * tanh(0.5 * z) + 0.5.
    """
    wf, uf, bf = fwd
    wb, ub, bb = bwd
    h = wf.shape[1] // 4

    def interleave(a_f, a_b):
        # [rows, 4H] x2 -> [rows, 8H] with columns [i_f,i_b,f_f,f_b,g_f,g_b,o_f,o_b]
        rows = a_f.shape[0]
        return jnp.stack([a_f.reshape(rows, 4, h), a_b.reshape(rows, 4, h)],
                         axis=2).reshape(rows, 8 * h)

    wih = interleave(wf, wb)                           # [Din, 8H]
    top = interleave(uf, jnp.zeros_like(uf))           # fwd h rows -> fwd gate cols only
    bot = interleave(jnp.zeros_like(ub), ub)           # bwd h rows -> bwd gate cols only
    whh = jnp.concatenate([top, bot], axis=0)          # [2H, 8H] block-diagonal
    bias = interleave(bf, bb)                          # [1, 8H]

    gate_scale = jnp.concatenate([jnp.full((2 * h,), 0.5, jnp.float32),   # i
                                  jnp.full((2 * h,), 0.5, jnp.float32),   # f
                                  jnp.ones((2 * h,), jnp.float32),        # g (tanh)
                                  jnp.full((2 * h,), 0.5, jnp.float32)])[None, :]  # o
    wih = wih * gate_scale
    whh = whh * gate_scale
    bias = bias * gate_scale
    return wih.astype(jnp.bfloat16), whh.astype(jnp.bfloat16), bias.astype(jnp.float32)


def pad_conv_params(conv_w, conv_b, lane=128):
    """Flatten conv filters to [K*E, C] and zero-pad channels to a lane-dense width."""
    k, e, c = conv_w.shape
    c_pad = ((c + lane - 1) // lane) * lane
    w2 = conv_w.reshape(k * e, c)
    w_pad = jnp.zeros((k * e, c_pad), jnp.float32).at[:, :c].set(w2).astype(jnp.bfloat16)
    b_pad = jnp.zeros((1, c_pad), jnp.float32).at[:, :c].set(conv_b)
    return w_pad, b_pad


# ------------------------------ Encoder forward -------------------------------
def encoder_forward(glove_ids, turian_ids, char_ids,
                    glove_table, turian_table, char_table,
                    conv_w_pad, conv_b_pad, n_conv_out, fused_lstm_params):
    B, T = glove_ids.shape
    # --- embedding lookups (gather glue; frozen tables) ---
    glove = jnp.take(glove_table, glove_ids, axis=0)            # [B, T, 300]
    turian = jnp.take(turian_table, turian_ids, axis=0)         # [B, T, 300]
    ce = jnp.take(char_table, char_ids, axis=0)                 # [B, T, Lc, E]
    Lc, E = ce.shape[2], ce.shape[3]
    K = conv_w_pad.shape[0] // E
    n_tok = B * T

    # CharCNN: lane-dense [n_tok, Lc*E] input, conv windows formed inside the kernel
    ce2d = ce.reshape(n_tok, Lc * E).astype(jnp.bfloat16)
    char_full = charcnn(ce2d, conv_w_pad, conv_b_pad, emb_dim=E, kernel_width=K)
    char_feat = char_full[:, :n_conv_out].reshape(B, T, n_conv_out)

    # embeds must be materialized anyway (it is the module's second output), so it is
    # also used directly as the layer-0 LSTM input.
    embeds = jnp.concatenate([glove, turian, char_feat], axis=-1)   # [B, T, 640]
    # dropout_embeds: identity (eval mode)

    h = jnp.transpose(embeds, (1, 0, 2))                        # time-major [T, B, D]
    for idx, layer in enumerate(("l0", "l1")):
        wih, whh, b = fused_lstm_params[layer]
        out_dtype = jnp.bfloat16 if idx == 0 else jnp.float32   # inter-layer hidden in bf16
        h = bilstm_layer(h, wih, whh, b, out_dtype=out_dtype)   # [T, B, 2H]
    # dropout_lstm: identity (eval mode)

    lstm_out = jnp.transpose(h, (1, 0, 2)).reshape(B * T, -1)   # torch.cat(regrouped, dim=0)
    embeds_out = embeds.reshape(B * T, -1)                      # torch.cat(embeds, dim=0)
    return lstm_out, embeds_out


# ------------------------------ pure-JAX reference -----------------------------
def _lstm_layer_ref(x, wih, whh, b):
    T, N, _ = x.shape
    H = whh.shape[0]
    h = jnp.zeros((N, H), jnp.float32)
    c = jnp.zeros((N, H), jnp.float32)
    outs = []
    for t in range(T):
        g = x[t] @ wih + h @ whh + b
        i = jax.nn.sigmoid(g[:, :H]); f = jax.nn.sigmoid(g[:, H:2 * H])
        gg = jnp.tanh(g[:, 2 * H:3 * H]); o = jax.nn.sigmoid(g[:, 3 * H:])
        c = f * c + i * gg
        h = o * jnp.tanh(c)
        outs.append(h)
    return jnp.stack(outs, axis=0)


def _charcnn_ref(ce, w, b):
    Ttot, Lc, _ = ce.shape
    K, _, C = w.shape
    mx = jnp.full((Ttot, C), -jnp.inf, jnp.float32)
    for p in range(Lc - K + 1):
        acc = sum(ce[:, p + k, :] @ w[k] for k in range(K)) + b
        mx = jnp.maximum(mx, jnp.maximum(acc, 0.0))
    return mx


def _encoder_ref(glove_ids, turian_ids, char_ids, glove_table, turian_table,
                 char_table, conv_w, conv_b, lstm_params):
    B, T = glove_ids.shape
    glove = jnp.take(glove_table, glove_ids, axis=0)
    turian = jnp.take(turian_table, turian_ids, axis=0)
    ce = jnp.take(char_table, char_ids, axis=0).reshape(B * T, char_ids.shape[-1], -1)
    char_feat = _charcnn_ref(ce, conv_w, conv_b).reshape(B, T, -1)
    embeds = jnp.concatenate([glove, turian, char_feat], axis=-1)
    h = jnp.transpose(embeds, (1, 0, 2))
    for layer in ("l0", "l1"):
        wf, uf, bf = lstm_params[(layer, "fwd")]
        wb, ub, bb = lstm_params[(layer, "bwd")]
        h_f = _lstm_layer_ref(h, wf, uf, bf)
        h_b = jnp.flip(_lstm_layer_ref(jnp.flip(h, 0), wb, ub, bb), 0)
        h = jnp.concatenate([h_f, h_b], axis=-1)
    return (jnp.transpose(h, (1, 0, 2)).reshape(B * T, -1),
            embeds.reshape(B * T, -1))


# ------------------------------------ main -------------------------------------
if __name__ == "__main__":
    key = jax.random.PRNGKey(0)
    B, T = 2, 8                 # batch of sentences, tokens per sentence
    H = 32                      # args.hidden_dim
    CCHAR = 40                  # args.char_conv_dim
    EMB = 300                   # glove / turian embedding dim
    GLOVE_V, TURIAN_V = 1000, 800   # tiny synthetic vocabularies
    Lc, CHV, CE, KW = 8, 50, 16, 3  # chars/token, char vocab, char emb dim, conv width
    D_EMB = 2 * EMB + CCHAR     # 640

    ks = jax.random.split(key, 16)
    glove_table = jax.random.normal(ks[0], (GLOVE_V, EMB), jnp.float32) * 0.1
    turian_table = jax.random.normal(ks[1], (TURIAN_V, EMB), jnp.float32) * 0.1
    char_table = jax.random.normal(ks[2], (CHV, CE), jnp.float32) * 0.1
    conv_w = jax.random.normal(ks[3], (KW, CE, CCHAR), jnp.float32) * 0.1
    conv_b = jax.random.normal(ks[4], (1, CCHAR), jnp.float32) * 0.1

    def lstm_params_init(k, din, h):
        k1, k2, k3 = jax.random.split(k, 3)
        s = 1.0 / np.sqrt(h)
        return (jax.random.uniform(k1, (din, 4 * h), jnp.float32, -s, s),
                jax.random.uniform(k2, (h, 4 * h), jnp.float32, -s, s),
                jax.random.uniform(k3, (1, 4 * h), jnp.float32, -s, s))

    lstm_params = {
        ("l0", "fwd"): lstm_params_init(ks[5], D_EMB, H),
        ("l0", "bwd"): lstm_params_init(ks[6], D_EMB, H),
        ("l1", "fwd"): lstm_params_init(ks[7], 2 * H, H),
        ("l1", "bwd"): lstm_params_init(ks[8], 2 * H, H),
    }

    # host-side weight prep: fuse fwd|bwd per layer (with 0.5-prescaled sigmoid gates),
    # pad conv channels to 128 lanes, cast MXU operands to bf16
    fused_lstm = {
        "l0": fuse_bilstm_params(lstm_params[("l0", "fwd")], lstm_params[("l0", "bwd")]),
        "l1": fuse_bilstm_params(lstm_params[("l1", "fwd")], lstm_params[("l1", "bwd")]),
    }
    conv_w_pad, conv_b_pad = pad_conv_params(conv_w, conv_b)

    # synthetic tokenized "sentences"
    glove_ids = jax.random.randint(ks[9], (B, T), 0, GLOVE_V)
    turian_ids = jax.random.randint(ks[10], (B, T), 0, TURIAN_V)
    char_ids = jax.random.randint(ks[11], (B, T, Lc), 0, CHV)

    run = jax.jit(encoder_forward, static_argnums=(8,))
    lstm_out, embeds_out = run(glove_ids, turian_ids, char_ids,
                               glove_table, turian_table, char_table,
                               conv_w_pad, conv_b_pad, CCHAR, fused_lstm)
    jax.block_until_ready((lstm_out, embeds_out))

    ref_lstm, ref_embeds = _encoder_ref(
        glove_ids, turian_ids, char_ids, glove_table, turian_table, char_table,
        conv_w, conv_b, lstm_params)

    assert lstm_out.shape == (B * T, 2 * H)
    assert embeds_out.shape == (B * T, D_EMB)
    # kernels use bf16 MXU operands (f32 accumulate); reference is pure f32 -> looser tol
    np.testing.assert_allclose(np.asarray(lstm_out), np.asarray(ref_lstm),
                               atol=2e-2, rtol=2e-2)
    np.testing.assert_allclose(np.asarray(embeds_out), np.asarray(ref_embeds),
                               atol=2e-2, rtol=2e-2)
    print("KERNEL_OK")
</pallas_src>

<mosaic_0001>
module attributes {stable_mosaic.version = 11 : i64} {
  func.func @charcnn_kernel(%arg0: i32, %arg1: memref<16x128xbf16, #tpu.memory_space<vmem>>, %arg2: memref<48x128xbf16, #tpu.memory_space<vmem>>, %arg3: memref<1x128xf32, #tpu.memory_space<vmem>>, %arg4: memref<16x128xf32, #tpu.memory_space<vmem>>) attributes {dimension_semantics = [#tpu.dimension_semantics<parallel>], iteration_bounds = array<i64: 1>, scalar_prefetch = 0 : i64, scratch_operands = 0 : i64, tpu.core_type = #tpu.core_type<tc>, window_params = [{transform_indices = @transform_0, window_bounds = array<i64: 16, 128>}, {pipeline_mode = #tpu.pipeline_mode<synchronous>, transform_indices = @transform_1, window_bounds = array<i64: 48, 128>}, {pipeline_mode = #tpu.pipeline_mode<synchronous>, transform_indices = @transform_2, window_bounds = array<i64: 1, 128>}, {transform_indices = @transform_3, window_bounds = array<i64: 16, 128>}]} {
    %c0 = arith.constant 0 : index
    %c0_0 = arith.constant 0 : index
    %0 = vector.load %arg2[%c0, %c0_0] : memref<48x128xbf16, #tpu.memory_space<vmem>>, vector<48x128xbf16>
    %c0_1 = arith.constant 0 : index
    %c0_2 = arith.constant 0 : index
    %1 = vector.load %arg3[%c0_1, %c0_2] : memref<1x128xf32, #tpu.memory_space<vmem>>, vector<1x128xf32>
    %c0_3 = arith.constant 0 : index
    %c0_4 = arith.constant 0 : index
    %2 = vector.load %arg1[%c0_3, %c0_4] : memref<16x128xbf16, #tpu.memory_space<vmem>>, vector<16x48xbf16>
    %cst = arith.constant dense<0.000000e+00> : vector<16x128xf32>
    %3 = tpu.matmul %2, %0, %cst {dimension_numbers = #tpu.dot_dimension_numbers<[1], [0], [0], [1], [0, 0, 1, 1], [], []>} : vector<16x48xbf16>, vector<48x128xbf16>, vector<16x128xf32> -> vector<16x128xf32>
    %4 = vector.broadcast %1 : vector<1x128xf32> to vector<16x128xf32>
    %5 = arith.addf %3, %4 : vector<16x128xf32>
    %cst_5 = arith.constant 0.000000e+00 : f32
    %6 = vector.broadcast %cst_5 : f32 to vector<16x128xf32>
    %7 = arith.maximumf %5, %6 : vector<16x128xf32>
    %c0_6 = arith.constant 0 : index
    %c16 = arith.constant 16 : index
    %8 = vector.load %arg1[%c0_6, %c16] : memref<16x128xbf16, #tpu.memory_space<vmem>>, vector<16x48xbf16>
    %cst_7 = arith.constant dense<0.000000e+00> : vector<16x128xf32>
    %9 = tpu.matmul %8, %0, %cst_7 {dimension_numbers = #tpu.dot_dimension_numbers<[1], [0], [0], [1], [0, 0, 1, 1], [], []>} : vector<16x48xbf16>, vector<48x128xbf16>, vector<16x128xf32> -> vector<16x128xf32>
    %10 = vector.broadcast %1 : vector<1x128xf32> to vector<16x128xf32>
    %11 = arith.addf %9, %10 : vector<16x128xf32>
    %cst_8 = arith.constant 0.000000e+00 : f32
    %12 = vector.broadcast %cst_8 : f32 to vector<16x128xf32>
    %13 = arith.maximumf %11, %12 : vector<16x128xf32>
    %14 = arith.maximumf %7, %13 : vector<16x128xf32>
    %c0_9 = arith.constant 0 : index
    %c32 = arith.constant 32 : index
    %15 = vector.load %arg1[%c0_9, %c32] : memref<16x128xbf16, #tpu.memory_space<vmem>>, vector<16x48xbf16>
    %cst_10 = arith.constant dense<0.000000e+00> : vector<16x128xf32>
    %16 = tpu.matmul %15, %0, %cst_10 {dimension_numbers = #tpu.dot_dimension_numbers<[1], [0], [0], [1], [0, 0, 1, 1], [], []>} : vector<16x48xbf16>, vector<48x128xbf16>, vector<16x128xf32> -> vector<16x128xf32>
    %17 = vector.broadcast %1 : vector<1x128xf32> to vector<16x128xf32>
    %18 = arith.addf %16, %17 : vector<16x128xf32>
    %cst_11 = arith.constant 0.000000e+00 : f32
    %19 = vector.broadcast %cst_11 : f32 to vector<16x128xf32>
    %20 = arith.maximumf %18, %19 : vector<16x128xf32>
    %21 = arith.maximumf %14, %20 : vector<16x128xf32>
    %c0_12 = arith.constant 0 : index
    %c48 = arith.constant 48 : index
    %22 = vector.load %arg1[%c0_12, %c48] : memref<16x128xbf16, #tpu.memory_space<vmem>>, vector<16x48xbf16>
    %cst_13 = arith.constant dense<0.000000e+00> : vector<16x128xf32>
    %23 = tpu.matmul %22, %0, %cst_13 {dimension_numbers = #tpu.dot_dimension_numbers<[1], [0], [0], [1], [0, 0, 1, 1], [], []>} : vector<16x48xbf16>, vector<48x128xbf16>, vector<16x128xf32> -> vector<16x128xf32>
    %24 = vector.broadcast %1 : vector<1x128xf32> to vector<16x128xf32>
    %25 = arith.addf %23, %24 : vector<16x128xf32>
    %cst_14 = arith.constant 0.000000e+00 : f32
    %26 = vector.broadcast %cst_14 : f32 to vector<16x128xf32>
    %27 = arith.maximumf %25, %26 : vector<16x128xf32>
    %28 = arith.maximumf %21, %27 : vector<16x128xf32>
    %c0_15 = arith.constant 0 : index
    %c64 = arith.constant 64 : index
    %29 = vector.load %arg1[%c0_15, %c64] : memref<16x128xbf16, #tpu.memory_space<vmem>>, vector<16x48xbf16>
    %cst_16 = arith.constant dense<0.000000e+00> : vector<16x128xf32>
    %30 = tpu.matmul %29, %0, %cst_16 {dimension_numbers = #tpu.dot_dimension_numbers<[1], [0], [0], [1], [0, 0, 1, 1], [], []>} : vector<16x48xbf16>, vector<48x128xbf16>, vector<16x128xf32> -> vector<16x128xf32>
    %31 = vector.broadcast %1 : vector<1x128xf32> to vector<16x128xf32>
    %32 = arith.addf %30, %31 : vector<16x128xf32>
    %cst_17 = arith.constant 0.000000e+00 : f32
    %33 = vector.broadcast %cst_17 : f32 to vector<16x128xf32>
    %34 = arith.maximumf %32, %33 : vector<16x128xf32>
    %35 = arith.maximumf %28, %34 : vector<16x128xf32>
    %c0_18 = arith.constant 0 : index
    %c80 = arith.constant 80 : index
    %36 = vector.load %arg1[%c0_18, %c80] : memref<16x128xbf16, #tpu.memory_space<vmem>>, vector<16x48xbf16>
    %cst_19 = arith.constant dense<0.000000e+00> : vector<16x128xf32>
    %37 = tpu.matmul %36, %0, %cst_19 {dimension_numbers = #tpu.dot_dimension_numbers<[1], [0], [0], [1], [0, 0, 1, 1], [], []>} : vector<16x48xbf16>, vector<48x128xbf16>, vector<16x128xf32> -> vector<16x128xf32>
    %38 = vector.broadcast %1 : vector<1x128xf32> to vector<16x128xf32>
    %39 = arith.addf %37, %38 : vector<16x128xf32>
    %cst_20 = arith.constant 0.000000e+00 : f32
    %40 = vector.broadcast %cst_20 : f32 to vector<16x128xf32>
    %41 = arith.maximumf %39, %40 : vector<16x128xf32>
    %42 = arith.maximumf %35, %41 : vector<16x128xf32>
    %c0_21 = arith.constant 0 : index
    %c0_22 = arith.constant 0 : index
    %43 = vector.load %arg4[%c0_21, %c0_22] : memref<16x128xf32, #tpu.memory_space<vmem>>, vector<16x128xf32>
    tpu.vector_store %arg4[%c0_21, %c0_22], %42 {strides = array<i32>} : memref<16x128xf32, #tpu.memory_space<vmem>>, vector<16x128xf32>,
    return
  }
  func.func @transform_0(%arg0: i32) -> (i32, i32) {
    %c0_i32 = arith.constant 0 : i32
    %c0_i32_0 = arith.constant 0 : i32
    return %arg0, %c0_i32 : i32, i32
  }
  func.func @transform_1(%arg0: i32) -> (i32, i32) {
    %c0_i32 = arith.constant 0 : i32
    %c0_i32_0 = arith.constant 0 : i32
    %c0_i32_1 = arith.constant 0 : i32
    return %c0_i32, %c0_i32_0 : i32, i32
  }
  func.func @transform_2(%arg0: i32) -> (i32, i32) {
    %c0_i32 = arith.constant 0 : i32
    %c0_i32_0 = arith.constant 0 : i32
    %c0_i32_1 = arith.constant 0 : i32
    return %c0_i32, %c0_i32_0 : i32, i32
  }
  func.func @transform_3(%arg0: i32) -> (i32, i32) {
    %c0_i32 = arith.constant 0 : i32
    %c0_i32_0 = arith.constant 0 : i32
    return %arg0, %c0_i32 : i32, i32
  }
}

module attributes {stable_mosaic.version = 11 : i64} {
  func.func @bilstm_kernel(%arg0: memref<16x640xbf16, #tpu.memory_space<vmem>>, %arg1: memref<640x256xbf16, #tpu.memory_space<vmem>>, %arg2: memref<64x256xbf16, #tpu.memory_space<vmem>>, %arg3: memref<1x256xf32, #tpu.memory_space<vmem>>, %arg4: memref<8x2x64xbf16, #tpu.memory_space<vmem>>, %arg5: memref<8x2x256xf32, #tpu.memory_space<vmem>>) attributes {dimension_semantics = [], scalar_prefetch = 0 : i64, scratch_operands = 1 : i64, tpu.core_type = #tpu.core_type<tc>} {
    %0 = tpu.iota {dimensions = array<i32: 1>} : vector<2x256xi32>
    %c64_i32 = arith.constant 64 : i32
    %c0_i32 = arith.constant 0 : i32
    %1 = arith.cmpi eq, %c64_i32, %c0_i32 : i32
    %c1_i32 = arith.constant 1 : i32
    %2 = arith.select %1, %c1_i32, %c64_i32 : i32
    %3 = vector.broadcast %2 : i32 to vector<2x256xi32>
    %4 = arith.remsi %0, %3 : vector<2x256xi32>
    %c0_i32_0 = arith.constant 0 : i32
    %5 = vector.broadcast %c0_i32_0 : i32 to vector<2x256xi32>
    %6 = arith.cmpi ne, %4, %5 : vector<2x256xi32>
    %c0_i32_1 = arith.constant 0 : i32
    %7 = vector.broadcast %c0_i32_1 : i32 to vector<2x256xi32>
    %8 = arith.cmpi slt, %4, %7 : vector<2x256xi32>
    %c0_i32_2 = arith.constant 0 : i32
    %9 = arith.cmpi slt, %2, %c0_i32_2 : i32
    %10 = vector.broadcast %9 : i1 to vector<2x256xi1>
    %11 = vector.broadcast %10 : vector<2x256xi1> to vector<2x256xi1>
    %12 = arith.xori %8, %11 : vector<2x256xi1>
    %13 = arith.andi %12, %6 : vector<2x256xi1>
    %14 = vector.broadcast %2 : i32 to vector<2x256xi32>
    %15 = arith.addi %4, %14 : vector<2x256xi32>
    %16 = arith.select %13, %15, %4 : vector<2x256xi1>, vector<2x256xi32>
    %c32_i32 = arith.constant 32 : i32
    %17 = vector.broadcast %c32_i32 : i32 to vector<2x256xi32>
    %18 = arith.cmpi slt, %16, %17 : vector<2x256xi32>
    %c128_i32 = arith.constant 128 : i32
    %19 = vector.broadcast %c128_i32 : i32 to vector<2x256xi32>
    %20 = arith.cmpi sge, %0, %19 : vector<2x256xi32>
    %c192_i32 = arith.constant 192 : i32
    %21 = vector.broadcast %c192_i32 : i32 to vector<2x256xi32>
    %22 = arith.cmpi slt, %0, %21 : vector<2x256xi32>
    %23 = arith.andi %20, %22 : vector<2x256xi1>
    %24 = tpu.iota {dimensions = array<i32: 1>} : vector<2x64xi32>
    %c32_i32_3 = arith.constant 32 : i32
    %25 = vector.broadcast %c32_i32_3 : i32 to vector<2x64xi32>
    %26 = arith.cmpi slt, %24, %25 : vector<2x64xi32>
    %c0 = arith.constant 0 : index
    %c0_4 = arith.constant 0 : index
    %27 = vector.load %arg0[%c0, %c0_4] : memref<16x640xbf16, #tpu.memory_space<vmem>>, vector<16x640xbf16>
    %c0_5 = arith.constant 0 : index
    %c0_6 = arith.constant 0 : index
    %28 = vector.load %arg1[%c0_5, %c0_6] : memref<640x256xbf16, #tpu.memory_space<vmem>>, vector<640x256xbf16>
    %cst = arith.constant dense<0.000000e+00> : vector<16x256xf32>
    %29 = tpu.matmul %27, %28, %cst {dimension_numbers = #tpu.dot_dimension_numbers<[1], [0], [0], [1], [0, 0, 1, 1], [], []>} : vector<16x640xbf16>, vector<640x256xbf16>, vector<16x256xf32> -> vector<16x256xf32>
    %c0_7 = arith.constant 0 : index
    %c0_8 = arith.constant 0 : index
    %30 = vector.load %arg3[%c0_7, %c0_8] : memref<1x256xf32, #tpu.memory_space<vmem>>, vector<1x256xf32>
    %31 = vector.broadcast %30 : vector<1x256xf32> to vector<16x256xf32>
    %32 = arith.addf %29, %31 : vector<16x256xf32>
    %33 = vector.extract_strided_slice %32 {offsets = [0, 0], sizes = [2, 256], strides = [1, 1]} : vector<16x256xf32> to vector<2x256xf32>
    %34 = vector.extract_strided_slice %32 {offsets = [14, 0], sizes = [2, 256], strides = [1, 1]} : vector<16x256xf32> to vector<2x256xf32>
    %35 = arith.select %18, %33, %34 : vector<2x256xi1>, vector<2x256xf32>
    %c0_9 = arith.constant 0 : index
    %c0_10 = arith.constant 0 : index
    %c0_11 = arith.constant 0 : index
    %36 = vector.load %arg5[%c0_9, %c0_10, %c0_11] : memref<8x2x256xf32, #tpu.memory_space<vmem>>, vector<1x2x256xf32>
    %37 = vector.shape_cast %36 : vector<1x2x256xf32> to vector<2x256xf32>
    %38 = vector.shape_cast %35 : vector<2x256xf32> to vector<1x2x256xf32>
    tpu.vector_store %arg5[%c0_9, %c0_10, %c0_11], %38 {strides = array<i32>} : memref<8x2x256xf32, #tpu.memory_space<vmem>>, vector<1x2x256xf32>,
    %39 = vector.extract_strided_slice %32 {offsets = [2, 0], sizes = [2, 256], strides = [1, 1]} : vector<16x256xf32> to vector<2x256xf32>
    %40 = vector.extract_strided_slice %32 {offsets = [12, 0], sizes = [2, 256], strides = [1, 1]} : vector<16x256xf32> to vector<2x256xf32>
    %41 = arith.select %18, %39, %40 : vector<2x256xi1>, vector<2x256xf32>
    %c1 = arith.constant 1 : index
    %c0_12 = arith.constant 0 : index
    %c0_13 = arith.constant 0 : index
    %42 = vector.load %arg5[%c1, %c0_12, %c0_13] : memref<8x2x256xf32, #tpu.memory_space<vmem>>, vector<1x2x256xf32>
    %43 = vector.shape_cast %42 : vector<1x2x256xf32> to vector<2x256xf32>
    %44 = vector.shape_cast %41 : vector<2x256xf32> to vector<1x2x256xf32>
    tpu.vector_store %arg5[%c1, %c0_12, %c0_13], %44 {strides = array<i32>} : memref<8x2x256xf32, #tpu.memory_space<vmem>>, vector<1x2x256xf32>,
    %45 = vector.extract_strided_slice %32 {offsets = [4, 0], sizes = [2, 256], strides = [1, 1]} : vector<16x256xf32> to vector<2x256xf32>
    %46 = vector.extract_strided_slice %32 {offsets = [10, 0], sizes = [2, 256], strides = [1, 1]} : vector<16x256xf32> to vector<2x256xf32>
    %47 = arith.select %18, %45, %46 : vector<2x256xi1>, vector<2x256xf32>
    %c2 = arith.constant 2 : index
    %c0_14 = arith.constant 0 : index
    %c0_15 = arith.constant 0 : index
    %48 = vector.load %arg5[%c2, %c0_14, %c0_15] : memref<8x2x256xf32, #tpu.memory_space<vmem>>, vector<1x2x256xf32>
    %49 = vector.shape_cast %48 : vector<1x2x256xf32> to vector<2x256xf32>
    %50 = vector.shape_cast %47 : vector<2x256xf32> to vector<1x2x256xf32>
    tpu.vector_store %arg5[%c2, %c0_14, %c0_15], %50 {strides = array<i32>} : memref<8x2x256xf32, #tpu.memory_space<vmem>>, vector<1x2x256xf32>,
    %51 = vector.extract_strided_slice %32 {offsets = [6, 0], sizes = [2, 256], strides = [1, 1]} : vector<16x256xf32> to vector<2x256xf32>
    %52 = vector.extract_strided_slice %32 {offsets = [8, 0], sizes = [2, 256], strides = [1, 1]} : vector<16x256xf32> to vector<2x256xf32>
    %53 = arith.select %18, %51, %52 : vector<2x256xi1>, vector<2x256xf32>
    %c3 = arith.constant 3 : index
    %c0_16 = arith.constant 0 : index
    %c0_17 = arith.constant 0 : index
    %54 = vector.load %arg5[%c3, %c0_16, %c0_17] : memref<8x2x256xf32, #tpu.memory_space<vmem>>, vector<1x2x256xf32>
    %55 = vector.shape_cast %54 : vector<1x2x256xf32> to vector<2x256xf32>
    %56 = vector.shape_cast %53 : vector<2x256xf32> to vector<1x2x256xf32>
    tpu.vector_store %arg5[%c3, %c0_16, %c0_17], %56 {strides = array<i32>} : memref<8x2x256xf32, #tpu.memory_space<vmem>>, vector<1x2x256xf32>,
    %57 = vector.extract_strided_slice %32 {offsets = [8, 0], sizes = [2, 256], strides = [1, 1]} : vector<16x256xf32> to vector<2x256xf32>
    %58 = vector.extract_strided_slice %32 {offsets = [6, 0], sizes = [2, 256], strides = [1, 1]} : vector<16x256xf32> to vector<2x256xf32>
    %59 = arith.select %18, %57, %58 : vector<2x256xi1>, vector<2x256xf32>
    %c4 = arith.constant 4 : index
    %c0_18 = arith.constant 0 : index
    %c0_19 = arith.constant 0 : index
    %60 = vector.load %arg5[%c4, %c0_18, %c0_19] : memref<8x2x256xf32, #tpu.memory_space<vmem>>, vector<1x2x256xf32>
    %61 = vector.shape_cast %60 : vector<1x2x256xf32> to vector<2x256xf32>
    %62 = vector.shape_cast %59 : vector<2x256xf32> to vector<1x2x256xf32>
    tpu.vector_store %arg5[%c4, %c0_18, %c0_19], %62 {strides = array<i32>} : memref<8x2x256xf32, #tpu.memory_space<vmem>>, vector<1x2x256xf32>,
    %63 = vector.extract_strided_slice %32 {offsets = [10, 0], sizes = [2, 256], strides = [1, 1]} : vector<16x256xf32> to vector<2x256xf32>
    %64 = vector.extract_strided_slice %32 {offsets = [4, 0], sizes = [2, 256], strides = [1, 1]} : vector<16x256xf32> to vector<2x256xf32>
    %65 = arith.select %18, %63, %64 : vector<2x256xi1>, vector<2x256xf32>
    %c5 = arith.constant 5 : index
    %c0_20 = arith.constant 0 : index
    %c0_21 = arith.constant 0 : index
    %66 = vector.load %arg5[%c5, %c0_20, %c0_21] : memref<8x2x256xf32, #tpu.memory_space<vmem>>, vector<1x2x256xf32>
    %67 = vector.shape_cast %66 : vector<1x2x256xf32> to vector<2x256xf32>
    %68 = vector.shape_cast %65 : vector<2x256xf32> to vector<1x2x256xf32>
    tpu.vector_store %arg5[%c5, %c0_20, %c0_21], %68 {strides = array<i32>} : memref<8x2x256xf32, #tpu.memory_space<vmem>>, vector<1x2x256xf32>,
    %69 = vector.extract_strided_slice %32 {offsets = [12, 0], sizes = [2, 256], strides = [1, 1]} : vector<16x256xf32> to vector<2x256xf32>
    %70 = vector.extract_strided_slice %32 {offsets = [2, 0], sizes = [2, 256], strides = [1, 1]} : vector<16x256xf32> to vector<2x256xf32>
    %71 = arith.select %18, %69, %70 : vector<2x256xi1>, vector<2x256xf32>
    %c6 = arith.constant 6 : index
    %c0_22 = arith.constant 0 : index
    %c0_23 = arith.constant 0 : index
    %72 = vector.load %arg5[%c6, %c0_22, %c0_23] : memref<8x2x256xf32, #tpu.memory_space<vmem>>, vector<1x2x256xf32>
    %73 = vector.shape_cast %72 : vector<1x2x256xf32> to vector<2x256xf32>
    %74 = vector.shape_cast %71 : vector<2x256xf32> to vector<1x2x256xf32>
    tpu.vector_store %arg5[%c6, %c0_22, %c0_23], %74 {strides = array<i32>} : memref<8x2x256xf32, #tpu.memory_space<vmem>>, vector<1x2x256xf32>,
    %75 = vector.extract_strided_slice %32 {offsets = [14, 0], sizes = [2, 256], strides = [1, 1]} : vector<16x256xf32> to vector<2x256xf32>
    %76 = vector.extract_strided_slice %32 {offsets = [0, 0], sizes = [2, 256], strides = [1, 1]} : vector<16x256xf32> to vector<2x256xf32>
    %77 = arith.select %18, %75, %76 : vector<2x256xi1>, vector<2x256xf32>
    %c7 = arith.constant 7 : index
    %c0_24 = arith.constant 0 : index
    %c0_25 = arith.constant 0 : index
    %78 = vector.load %arg5[%c7, %c0_24, %c0_25] : memref<8x2x256xf32, #tpu.memory_space<vmem>>, vector<1x2x256xf32>
    %79 = vector.shape_cast %78 : vector<1x2x256xf32> to vector<2x256xf32>
    %80 = vector.shape_cast %77 : vector<2x256xf32> to vector<1x2x256xf32>
    tpu.vector_store %arg5[%c7, %c0_24, %c0_25], %80 {strides = array<i32>} : memref<8x2x256xf32, #tpu.memory_space<vmem>>, vector<1x2x256xf32>,
    %c0_26 = arith.constant 0 : index
    %c0_27 = arith.constant 0 : index
    %81 = vector.load %arg2[%c0_26, %c0_27] : memref<64x256xbf16, #tpu.memory_space<vmem>>, vector<64x256xbf16>
    %cst_28 = arith.constant 0.000000e+00 : f32
    %82 = vector.broadcast %cst_28 : f32 to vector<2x64xf32>
    %cst_29 = arith.constant 0.000000e+00 : f32
    %83 = vector.broadcast %cst_29 : f32 to vector<2x64xf32>
    %c0_i32_30 = arith.constant 0 : i32
    %c8_i32 = arith.constant 8 : i32
    %84 = arith.addi %c0_i32_30, %c8_i32 : i32
    %c1_i32_31 = arith.constant 1 : i32
    %85:2 = scf.for %arg6 = %c0_i32_30 to %84 step %c1_i32_31 iter_args(%arg7 = %82, %arg8 = %83) -> (vector<2x64xf32>, vector<2x64xf32>)  : i32 {
      %134 = arith.index_cast %arg6 : i32 to index
      %c0_81 = arith.constant 0 : index
      %c0_82 = arith.constant 0 : index
      %135 = vector.load %arg5[%134, %c0_81, %c0_82] : memref<8x2x256xf32, #tpu.memory_space<vmem>>, vector<1x2x256xf32>
      %136 = vector.shape_cast %135 : vector<1x2x256xf32> to vector<2x256xf32>
      %137 = arith.truncf %arg7 : vector<2x64xf32> to vector<2x64xbf16>
      %cst_83 = arith.constant dense<0.000000e+00> : vector<2x256xf32>
      %138 = tpu.matmul %137, %81, %cst_83 {dimension_numbers = #tpu.dot_dimension_numbers<[1], [0], [0], [1], [0, 0, 1, 1], [], []>} : vector<2x64xbf16>, vector<64x256xbf16>, vector<2x256xf32> -> vector<2x256xf32>
      %139 = arith.addf %136, %138 : vector<2x256xf32>
      %140 = math.tanh %139 : vector<2x256xf32>
      %cst_84 = arith.constant 5.000000e-01 : f32
      %141 = vector.broadcast %cst_84 : f32 to vector<2x256xf32>
      %142 = arith.mulf %141, %140 : vector<2x256xf32>
      %cst_85 = arith.constant 5.000000e-01 : f32
      %143 = vector.broadcast %cst_85 : f32 to vector<2x256xf32>
      %144 = arith.addf %142, %143 : vector<2x256xf32>
      %145 = arith.select %23, %140, %144 : vector<2x256xi1>, vector<2x256xf32>
      %146 = vector.extract_strided_slice %145 {offsets = [0, 0], sizes = [2, 64], strides = [1, 1]} : vector<2x256xf32> to vector<2x64xf32>
      %147 = vector.extract_strided_slice %145 {offsets = [0, 64], sizes = [2, 64], strides = [1, 1]} : vector<2x256xf32> to vector<2x64xf32>
      %148 = vector.extract_strided_slice %145 {offsets = [0, 128], sizes = [2, 64], strides = [1, 1]} : vector<2x256xf32> to vector<2x64xf32>
      %149 = vector.extract_strided_slice %145 {offsets = [0, 192], sizes = [2, 64], strides = [1, 1]} : vector<2x256xf32> to vector<2x64xf32>
      %150 = arith.mulf %147, %arg8 : vector<2x64xf32>
      %151 = arith.mulf %146, %148 : vector<2x64xf32>
      %152 = arith.addf %150, %151 : vector<2x64xf32>
      %153 = math.tanh %152 : vector<2x64xf32>
      %154 = arith.mulf %149, %153 : vector<2x64xf32>
      %155 = arith.truncf %154 : vector<2x64xf32> to vector<2x64xbf16>
      %156 = arith.index_cast %arg6 : i32 to index
      %c0_86 = arith.constant 0 : index
      %c0_87 = arith.constant 0 : index
      %157 = vector.load %arg4[%156, %c0_86, %c0_87] : memref<8x2x64xbf16, #tpu.memory_space<vmem>>, vector<1x2x64xbf16>
      %158 = vector.shape_cast %157 : vector<1x2x64xbf16> to vector<2x64xbf16>
      %159 = vector.shape_cast %155 : vector<2x64xbf16> to vector<1x2x64xbf16>
      tpu.vector_store %arg4[%156, %c0_86, %c0_87], %159 {strides = array<i32>} : memref<8x2x64xbf16, #tpu.memory_space<vmem>>, vector<1x2x64xbf16>,
      scf.yield %154, %152 : vector<2x64xf32>, vector<2x64xf32>
    }
    %c8_i32_32 = arith.constant 8 : i32
    %c0_33 = arith.constant 0 : index
    %c0_34 = arith.constant 0 : index
    %c0_35 = arith.constant 0 : index
    %86 = vector.load %arg4[%c0_33, %c0_34, %c0_35] : memref<8x2x64xbf16, #tpu.memory_space<vmem>>, vector<1x2x64xbf16>
    %87 = vector.shape_cast %86 : vector<1x2x64xbf16> to vector<2x64xbf16>
    %c7_36 = arith.constant 7 : index
    %c0_37 = arith.constant 0 : index
    %c0_38 = arith.constant 0 : index
    %88 = vector.load %arg4[%c7_36, %c0_37, %c0_38] : memref<8x2x64xbf16, #tpu.memory_space<vmem>>, vector<1x2x64xbf16>
    %89 = vector.shape_cast %88 : vector<1x2x64xbf16> to vector<2x64xbf16>
    %90 = arith.select %26, %87, %89 : vector<2x64xi1>, vector<2x64xbf16>
    %c0_39 = arith.constant 0 : index
    %c0_40 = arith.constant 0 : index
    %c0_41 = arith.constant 0 : index
    %91 = vector.load %arg4[%c0_39, %c0_40, %c0_41] : memref<8x2x64xbf16, #tpu.memory_space<vmem>>, vector<1x2x64xbf16>
    %92 = vector.shape_cast %91 : vector<1x2x64xbf16> to vector<2x64xbf16>
    %93 = vector.shape_cast %90 : vector<2x64xbf16> to vector<1x2x64xbf16>
    tpu.vector_store %arg4[%c0_39, %c0_40, %c0_41], %93 {strides = array<i32>} : memref<8x2x64xbf16, #tpu.memory_space<vmem>>, vector<1x2x64xbf16>,
    %94 = arith.select %26, %89, %87 : vector<2x64xi1>, vector<2x64xbf16>
    %c7_42 = arith.constant 7 : index
    %c0_43 = arith.constant 0 : index
    %c0_44 = arith.constant 0 : index
    %95 = vector.load %arg4[%c7_42, %c0_43, %c0_44] : memref<8x2x64xbf16, #tpu.memory_space<vmem>>, vector<1x2x64xbf16>
    %96 = vector.shape_cast %95 : vector<1x2x64xbf16> to vector<2x64xbf16>
    %97 = vector.shape_cast %94 : vector<2x64xbf16> to vector<1x2x64xbf16>
    tpu.vector_store %arg4[%c7_42, %c0_43, %c0_44], %97 {strides = array<i32>} : memref<8x2x64xbf16, #tpu.memory_space<vmem>>, vector<1x2x64xbf16>,
    %c1_45 = arith.constant 1 : index
    %c0_46 = arith.constant 0 : index
    %c0_47 = arith.constant 0 : index
    %98 = vector.load %arg4[%c1_45, %c0_46, %c0_47] : memref<8x2x64xbf16, #tpu.memory_space<vmem>>, vector<1x2x64xbf16>
    %99 = vector.shape_cast %98 : vector<1x2x64xbf16> to vector<2x64xbf16>
    %c6_48 = arith.constant 6 : index
    %c0_49 = arith.constant 0 : index
    %c0_50 = arith.constant 0 : index
    %100 = vector.load %arg4[%c6_48, %c0_49, %c0_50] : memref<8x2x64xbf16, #tpu.memory_space<vmem>>, vector<1x2x64xbf16>
    %101 = vector.shape_cast %100 : vector<1x2x64xbf16> to vector<2x64xbf16>
    %102 = arith.select %26, %99, %101 : vector<2x64xi1>, vector<2x64xbf16>
    %c1_51 = arith.constant 1 : index
    %c0_52 = arith.constant 0 : index
    %c0_53 = arith.constant 0 : index
    %103 = vector.load %arg4[%c1_51, %c0_52, %c0_53] : memref<8x2x64xbf16, #tpu.memory_space<vmem>>, vector<1x2x64xbf16>
    %104 = vector.shape_cast %103 : vector<1x2x64xbf16> to vector<2x64xbf16>
    %105 = vector.shape_cast %102 : vector<2x64xbf16> to vector<1x2x64xbf16>
    tpu.vector_store %arg4[%c1_51, %c0_52, %c0_53], %105 {strides = array<i32>} : memref<8x2x64xbf16, #tpu.memory_space<vmem>>, vector<1x2x64xbf16>,
    %106 = arith.select %26, %101, %99 : vector<2x64xi1>, vector<2x64xbf16>
    %c6_54 = arith.constant 6 : index
    %c0_55 = arith.constant 0 : index
    %c0_56 = arith.constant 0 : index
    %107 = vector.load %arg4[%c6_54, %c0_55, %c0_56] : memref<8x2x64xbf16, #tpu.memory_space<vmem>>, vector<1x2x64xbf16>
    %108 = vector.shape_cast %107 : vector<1x2x64xbf16> to vector<2x64xbf16>
    %109 = vector.shape_cast %106 : vector<2x64xbf16> to vector<1x2x64xbf16>
    tpu.vector_store %arg4[%c6_54, %c0_55, %c0_56], %109 {strides = array<i32>} : memref<8x2x64xbf16, #tpu.memory_space<vmem>>, vector<1x2x64xbf16>,
    %c2_57 = arith.constant 2 : index
    %c0_58 = arith.constant 0 : index
    %c0_59 = arith.constant 0 : index
    %110 = vector.load %arg4[%c2_57, %c0_58, %c0_59] : memref<8x2x64xbf16, #tpu.memory_space<vmem>>, vector<1x2x64xbf16>
    %111 = vector.shape_cast %110 : vector<1x2x64xbf16> to vector<2x64xbf16>
    %c5_60 = arith.constant 5 : index
    %c0_61 = arith.constant 0 : index
    %c0_62 = arith.constant 0 : index
    %112 = vector.load %arg4[%c5_60, %c0_61, %c0_62] : memref<8x2x64xbf16, #tpu.memory_space<vmem>>, vector<1x2x64xbf16>
    %113 = vector.shape_cast %112 : vector<1x2x64xbf16> to vector<2x64xbf16>
    %114 = arith.select %26, %111, %113 : vector<2x64xi1>, vector<2x64xbf16>
    %c2_63 = arith.constant 2 : index
    %c0_64 = arith.constant 0 : index
    %c0_65 = arith.constant 0 : index
    %115 = vector.load %arg4[%c2_63, %c0_64, %c0_65] : memref<8x2x64xbf16, #tpu.memory_space<vmem>>, vector<1x2x64xbf16>
    %116 = vector.shape_cast %115 : vector<1x2x64xbf16> to vector<2x64xbf16>
    %117 = vector.shape_cast %114 : vector<2x64xbf16> to vector<1x2x64xbf16>
    tpu.vector_store %arg4[%c2_63, %c0_64, %c0_65], %117 {strides = array<i32>} : memref<8x2x64xbf16, #tpu.memory_space<vmem>>, vector<1x2x64xbf16>,
    %118 = arith.select %26, %113, %111 : vector<2x64xi1>, vector<2x64xbf16>
    %c5_66 = arith.constant 5 : index
    %c0_67 = arith.constant 0 : index
    %c0_68 = arith.constant 0 : index
    %119 = vector.load %arg4[%c5_66, %c0_67, %c0_68] : memref<8x2x64xbf16, #tpu.memory_space<vmem>>, vector<1x2x64xbf16>
    %120 = vector.shape_cast %119 : vector<1x2x64xbf16> to vector<2x64xbf16>
    %121 = vector.shape_cast %118 : vector<2x64xbf16> to vector<1x2x64xbf16>
    tpu.vector_store %arg4[%c5_66, %c0_67, %c0_68], %121 {strides = array<i32>} : memref<8x2x64xbf16, #tpu.memory_space<vmem>>, vector<1x2x64xbf16>,
    %c3_69 = arith.constant 3 : index
    %c0_70 = arith.constant 0 : index
    %c0_71 = arith.constant 0 : index
    %122 = vector.load %arg4[%c3_69, %c0_70, %c0_71] : memref<8x2x64xbf16, #tpu.memory_space<vmem>>, vector<1x2x64xbf16>
    %123 = vector.shape_cast %122 : vector<1x2x64xbf16> to vector<2x64xbf16>
    %c4_72 = arith.constant 4 : index
    %c0_73 = arith.constant 0 : index
    %c0_74 = arith.constant 0 : index
    %124 = vector.load %arg4[%c4_72, %c0_73, %c0_74] : memref<8x2x64xbf16, #tpu.memory_space<vmem>>, vector<1x2x64xbf16>
    %125 = vector.shape_cast %124 : vector<1x2x64xbf16> to vector<2x64xbf16>
    %126 = arith.select %26, %123, %125 : vector<2x64xi1>, vector<2x64xbf16>
    %c3_75 = arith.constant 3 : index
    %c0_76 = arith.constant 0 : index
    %c0_77 = arith.constant 0 : index
    %127 = vector.load %arg4[%c3_75, %c0_76, %c0_77] : memref<8x2x64xbf16, #tpu.memory_space<vmem>>, vector<1x2x64xbf16>
    %128 = vector.shape_cast %127 : vector<1x2x64xbf16> to vector<2x64xbf16>
    %129 = vector.shape_cast %126 : vector<2x64xbf16> to vector<1x2x64xbf16>
    tpu.vector_store %arg4[%c3_75, %c0_76, %c0_77], %129 {strides = array<i32>} : memref<8x2x64xbf16, #tpu.memory_space<vmem>>, vector<1x2x64xbf16>,
    %130 = arith.select %26, %125, %123 : vector<2x64xi1>, vector<2x64xbf16>
    %c4_78 = arith.constant 4 : index
    %c0_79 = arith.constant 0 : index
    %c0_80 = arith.constant 0 : index
    %131 = vector.load %arg4[%c4_78, %c0_79, %c0_80] : memref<8x2x64xbf16, #tpu.memory_space<vmem>>, vector<1x2x64xbf16>
    %132 = vector.shape_cast %131 : vector<1x2x64xbf16> to vector<2x64xbf16>
    %133 = vector.shape_cast %130 : vector<2x64xbf16> to vector<1x2x64xbf16>
    tpu.vector_store %arg4[%c4_78, %c0_79, %c0_80], %133 {strides = array<i32>} : memref<8x2x64xbf16, #tpu.memory_space<vmem>>, vector<1x2x64xbf16>,
    return
  }
}

module attributes {stable_mosaic.version = 11 : i64} {
  func.func @bilstm_kernel(%arg0: memref<16x64xbf16, #tpu.memory_space<vmem>>, %arg1: memref<64x256xbf16, #tpu.memory_space<vmem>>, %arg2: memref<64x256xbf16, #tpu.memory_space<vmem>>, %arg3: memref<1x256xf32, #tpu.memory_space<vmem>>, %arg4: memref<8x2x64xf32, #tpu.memory_space<vmem>>, %arg5: memref<8x2x256xf32, #tpu.memory_space<vmem>>) attributes {dimension_semantics = [], scalar_prefetch = 0 : i64, scratch_operands = 1 : i64, tpu.core_type = #tpu.core_type<tc>} {
    %0 = tpu.iota {dimensions = array<i32: 1>} : vector<2x256xi32>
    %c64_i32 = arith.constant 64 : i32
    %c0_i32 = arith.constant 0 : i32
    %1 = arith.cmpi eq, %c64_i32, %c0_i32 : i32
    %c1_i32 = arith.constant 1 : i32
    %2 = arith.select %1, %c1_i32, %c64_i32 : i32
    %3 = vector.broadcast %2 : i32 to vector<2x256xi32>
    %4 = arith.remsi %0, %3 : vector<2x256xi32>
    %c0_i32_0 = arith.constant 0 : i32
    %5 = vector.broadcast %c0_i32_0 : i32 to vector<2x256xi32>
    %6 = arith.cmpi ne, %4, %5 : vector<2x256xi32>
    %c0_i32_1 = arith.constant 0 : i32
    %7 = vector.broadcast %c0_i32_1 : i32 to vector<2x256xi32>
    %8 = arith.cmpi slt, %4, %7 : vector<2x256xi32>
    %c0_i32_2 = arith.constant 0 : i32
    %9 = arith.cmpi slt, %2, %c0_i32_2 : i32
    %10 = vector.broadcast %9 : i1 to vector<2x256xi1>
    %11 = vector.broadcast %10 : vector<2x256xi1> to vector<2x256xi1>
    %12 = arith.xori %8, %11 : vector<2x256xi1>
    %13 = arith.andi %12, %6 : vector<2x256xi1>
    %14 = vector.broadcast %2 : i32 to vector<2x256xi32>
    %15 = arith.addi %4, %14 : vector<2x256xi32>
    %16 = arith.select %13, %15, %4 : vector<2x256xi1>, vector<2x256xi32>
    %c32_i32 = arith.constant 32 : i32
    %17 = vector.broadcast %c32_i32 : i32 to vector<2x256xi32>
    %18 = arith.cmpi slt, %16, %17 : vector<2x256xi32>
    %c128_i32 = arith.constant 128 : i32
    %19 = vector.broadcast %c128_i32 : i32 to vector<2x256xi32>
    %20 = arith.cmpi sge, %0, %19 : vector<2x256xi32>
    %c192_i32 = arith.constant 192 : i32
    %21 = vector.broadcast %c192_i32 : i32 to vector<2x256xi32>
    %22 = arith.cmpi slt, %0, %21 : vector<2x256xi32>
    %23 = arith.andi %20, %22 : vector<2x256xi1>
    %24 = tpu.iota {dimensions = array<i32: 1>} : vector<2x64xi32>
    %c32_i32_3 = arith.constant 32 : i32
    %25 = vector.broadcast %c32_i32_3 : i32 to vector<2x64xi32>
    %26 = arith.cmpi slt, %24, %25 : vector<2x64xi32>
    %c0 = arith.constant 0 : index
    %c0_4 = arith.constant 0 : index
    %27 = vector.load %arg0[%c0, %c0_4] : memref<16x64xbf16, #tpu.memory_space<vmem>>, vector<16x64xbf16>
    %c0_5 = arith.constant 0 : index
    %c0_6 = arith.constant 0 : index
    %28 = vector.load %arg1[%c0_5, %c0_6] : memref<64x256xbf16, #tpu.memory_space<vmem>>, vector<64x256xbf16>
    %cst = arith.constant dense<0.000000e+00> : vector<16x256xf32>
    %29 = tpu.matmul %27, %28, %cst {dimension_numbers = #tpu.dot_dimension_numbers<[1], [0], [0], [1], [0, 0, 1, 1], [], []>} : vector<16x64xbf16>, vector<64x256xbf16>, vector<16x256xf32> -> vector<16x256xf32>
    %c0_7 = arith.constant 0 : index
    %c0_8 = arith.constant 0 : index
    %30 = vector.load %arg3[%c0_7, %c0_8] : memref<1x256xf32, #tpu.memory_space<vmem>>, vector<1x256xf32>
    %31 = vector.broadcast %30 : vector<1x256xf32> to vector<16x256xf32>
    %32 = arith.addf %29, %31 : vector<16x256xf32>
    %33 = vector.extract_strided_slice %32 {offsets = [0, 0], sizes = [2, 256], strides = [1, 1]} : vector<16x256xf32> to vector<2x256xf32>
    %34 = vector.extract_strided_slice %32 {offsets = [14, 0], sizes = [2, 256], strides = [1, 1]} : vector<16x256xf32> to vector<2x256xf32>
    %35 = arith.select %18, %33, %34 : vector<2x256xi1>, vector<2x256xf32>
    %c0_9 = arith.constant 0 : index
    %c0_10 = arith.constant 0 : index
    %c0_11 = arith.constant 0 : index
    %36 = vector.load %arg5[%c0_9, %c0_10, %c0_11] : memref<8x2x256xf32, #tpu.memory_space<vmem>>, vector<1x2x256xf32>
    %37 = vector.shape_cast %36 : vector<1x2x256xf32> to vector<2x256xf32>
    %38 = vector.shape_cast %35 : vector<2x256xf32> to vector<1x2x256xf32>
    tpu.vector_store %arg5[%c0_9, %c0_10, %c0_11], %38 {strides = array<i32>} : memref<8x2x256xf32, #tpu.memory_space<vmem>>, vector<1x2x256xf32>,
    %39 = vector.extract_strided_slice %32 {offsets = [2, 0], sizes = [2, 256], strides = [1, 1]} : vector<16x256xf32> to vector<2x256xf32>
    %40 = vector.extract_strided_slice %32 {offsets = [12, 0], sizes = [2, 256], strides = [1, 1]} : vector<16x256xf32> to vector<2x256xf32>
    %41 = arith.select %18, %39, %40 : vector<2x256xi1>, vector<2x256xf32>
    %c1 = arith.constant 1 : index
    %c0_12 = arith.constant 0 : index
    %c0_13 = arith.constant 0 : index
    %42 = vector.load %arg5[%c1, %c0_12, %c0_13] : memref<8x2x256xf32, #tpu.memory_space<vmem>>, vector<1x2x256xf32>
    %43 = vector.shape_cast %42 : vector<1x2x256xf32> to vector<2x256xf32>
    %44 = vector.shape_cast %41 : vector<2x256xf32> to vector<1x2x256xf32>
    tpu.vector_store %arg5[%c1, %c0_12, %c0_13], %44 {strides = array<i32>} : memref<8x2x256xf32, #tpu.memory_space<vmem>>, vector<1x2x256xf32>,
    %45 = vector.extract_strided_slice %32 {offsets = [4, 0], sizes = [2, 256], strides = [1, 1]} : vector<16x256xf32> to vector<2x256xf32>
    %46 = vector.extract_strided_slice %32 {offsets = [10, 0], sizes = [2, 256], strides = [1, 1]} : vector<16x256xf32> to vector<2x256xf32>
    %47 = arith.select %18, %45, %46 : vector<2x256xi1>, vector<2x256xf32>
    %c2 = arith.constant 2 : index
    %c0_14 = arith.constant 0 : index
    %c0_15 = arith.constant 0 : index
    %48 = vector.load %arg5[%c2, %c0_14, %c0_15] : memref<8x2x256xf32, #tpu.memory_space<vmem>>, vector<1x2x256xf32>
    %49 = vector.shape_cast %48 : vector<1x2x256xf32> to vector<2x256xf32>
    %50 = vector.shape_cast %47 : vector<2x256xf32> to vector<1x2x256xf32>
    tpu.vector_store %arg5[%c2, %c0_14, %c0_15], %50 {strides = array<i32>} : memref<8x2x256xf32, #tpu.memory_space<vmem>>, vector<1x2x256xf32>,
    %51 = vector.extract_strided_slice %32 {offsets = [6, 0], sizes = [2, 256], strides = [1, 1]} : vector<16x256xf32> to vector<2x256xf32>
    %52 = vector.extract_strided_slice %32 {offsets = [8, 0], sizes = [2, 256], strides = [1, 1]} : vector<16x256xf32> to vector<2x256xf32>
    %53 = arith.select %18, %51, %52 : vector<2x256xi1>, vector<2x256xf32>
    %c3 = arith.constant 3 : index
    %c0_16 = arith.constant 0 : index
    %c0_17 = arith.constant 0 : index
    %54 = vector.load %arg5[%c3, %c0_16, %c0_17] : memref<8x2x256xf32, #tpu.memory_space<vmem>>, vector<1x2x256xf32>
    %55 = vector.shape_cast %54 : vector<1x2x256xf32> to vector<2x256xf32>
    %56 = vector.shape_cast %53 : vector<2x256xf32> to vector<1x2x256xf32>
    tpu.vector_store %arg5[%c3, %c0_16, %c0_17], %56 {strides = array<i32>} : memref<8x2x256xf32, #tpu.memory_space<vmem>>, vector<1x2x256xf32>,
    %57 = vector.extract_strided_slice %32 {offsets = [8, 0], sizes = [2, 256], strides = [1, 1]} : vector<16x256xf32> to vector<2x256xf32>
    %58 = vector.extract_strided_slice %32 {offsets = [6, 0], sizes = [2, 256], strides = [1, 1]} : vector<16x256xf32> to vector<2x256xf32>
    %59 = arith.select %18, %57, %58 : vector<2x256xi1>, vector<2x256xf32>
    %c4 = arith.constant 4 : index
    %c0_18 = arith.constant 0 : index
    %c0_19 = arith.constant 0 : index
    %60 = vector.load %arg5[%c4, %c0_18, %c0_19] : memref<8x2x256xf32, #tpu.memory_space<vmem>>, vector<1x2x256xf32>
    %61 = vector.shape_cast %60 : vector<1x2x256xf32> to vector<2x256xf32>
    %62 = vector.shape_cast %59 : vector<2x256xf32> to vector<1x2x256xf32>
    tpu.vector_store %arg5[%c4, %c0_18, %c0_19], %62 {strides = array<i32>} : memref<8x2x256xf32, #tpu.memory_space<vmem>>, vector<1x2x256xf32>,
    %63 = vector.extract_strided_slice %32 {offsets = [10, 0], sizes = [2, 256], strides = [1, 1]} : vector<16x256xf32> to vector<2x256xf32>
    %64 = vector.extract_strided_slice %32 {offsets = [4, 0], sizes = [2, 256], strides = [1, 1]} : vector<16x256xf32> to vector<2x256xf32>
    %65 = arith.select %18, %63, %64 : vector<2x256xi1>, vector<2x256xf32>
    %c5 = arith.constant 5 : index
    %c0_20 = arith.constant 0 : index
    %c0_21 = arith.constant 0 : index
    %66 = vector.load %arg5[%c5, %c0_20, %c0_21] : memref<8x2x256xf32, #tpu.memory_space<vmem>>, vector<1x2x256xf32>
    %67 = vector.shape_cast %66 : vector<1x2x256xf32> to vector<2x256xf32>
    %68 = vector.shape_cast %65 : vector<2x256xf32> to vector<1x2x256xf32>
    tpu.vector_store %arg5[%c5, %c0_20, %c0_21], %68 {strides = array<i32>} : memref<8x2x256xf32, #tpu.memory_space<vmem>>, vector<1x2x256xf32>,
    %69 = vector.extract_strided_slice %32 {offsets = [12, 0], sizes = [2, 256], strides = [1, 1]} : vector<16x256xf32> to vector<2x256xf32>
    %70 = vector.extract_strided_slice %32 {offsets = [2, 0], sizes = [2, 256], strides = [1, 1]} : vector<16x256xf32> to vector<2x256xf32>
    %71 = arith.select %18, %69, %70 : vector<2x256xi1>, vector<2x256xf32>
    %c6 = arith.constant 6 : index
    %c0_22 = arith.constant 0 : index
    %c0_23 = arith.constant 0 : index
    %72 = vector.load %arg5[%c6, %c0_22, %c0_23] : memref<8x2x256xf32, #tpu.memory_space<vmem>>, vector<1x2x256xf32>
    %73 = vector.shape_cast %72 : vector<1x2x256xf32> to vector<2x256xf32>
    %74 = vector.shape_cast %71 : vector<2x256xf32> to vector<1x2x256xf32>
    tpu.vector_store %arg5[%c6, %c0_22, %c0_23], %74 {strides = array<i32>} : memref<8x2x256xf32, #tpu.memory_space<vmem>>, vector<1x2x256xf32>,
    %75 = vector.extract_strided_slice %32 {offsets = [14, 0], sizes = [2, 256], strides = [1, 1]} : vector<16x256xf32> to vector<2x256xf32>
    %76 = vector.extract_strided_slice %32 {offsets = [0, 0], sizes = [2, 256], strides = [1, 1]} : vector<16x256xf32> to vector<2x256xf32>
    %77 = arith.select %18, %75, %76 : vector<2x256xi1>, vector<2x256xf32>
    %c7 = arith.constant 7 : index
    %c0_24 = arith.constant 0 : index
    %c0_25 = arith.constant 0 : index
    %78 = vector.load %arg5[%c7, %c0_24, %c0_25] : memref<8x2x256xf32, #tpu.memory_space<vmem>>, vector<1x2x256xf32>
    %79 = vector.shape_cast %78 : vector<1x2x256xf32> to vector<2x256xf32>
    %80 = vector.shape_cast %77 : vector<2x256xf32> to vector<1x2x256xf32>
    tpu.vector_store %arg5[%c7, %c0_24, %c0_25], %80 {strides = array<i32>} : memref<8x2x256xf32, #tpu.memory_space<vmem>>, vector<1x2x256xf32>,
    %c0_26 = arith.constant 0 : index
    %c0_27 = arith.constant 0 : index
    %81 = vector.load %arg2[%c0_26, %c0_27] : memref<64x256xbf16, #tpu.memory_space<vmem>>, vector<64x256xbf16>
    %cst_28 = arith.constant 0.000000e+00 : f32
    %82 = vector.broadcast %cst_28 : f32 to vector<2x64xf32>
    %cst_29 = arith.constant 0.000000e+00 : f32
    %83 = vector.broadcast %cst_29 : f32 to vector<2x64xf32>
    %c0_i32_30 = arith.constant 0 : i32
    %c8_i32 = arith.constant 8 : i32
    %84 = arith.addi %c0_i32_30, %c8_i32 : i32
    %c1_i32_31 = arith.constant 1 : i32
    %85:2 = scf.for %arg6 = %c0_i32_30 to %84 step %c1_i32_31 iter_args(%arg7 = %82, %arg8 = %83) -> (vector<2x64xf32>, vector<2x64xf32>)  : i32 {
      %134 = arith.index_cast %arg6 : i32 to index
      %c0_81 = arith.constant 0 : index
      %c0_82 = arith.constant 0 : index
      %135 = vector.load %arg5[%134, %c0_81, %c0_82] : memref<8x2x256xf32, #tpu.memory_space<vmem>>, vector<1x2x256xf32>
      %136 = vector.shape_cast %135 : vector<1x2x256xf32> to vector<2x256xf32>
      %137 = arith.truncf %arg7 : vector<2x64xf32> to vector<2x64xbf16>
      %cst_83 = arith.constant dense<0.000000e+00> : vector<2x256xf32>
      %138 = tpu.matmul %137, %81, %cst_83 {dimension_numbers = #tpu.dot_dimension_numbers<[1], [0], [0], [1], [0, 0, 1, 1], [], []>} : vector<2x64xbf16>, vector<64x256xbf16>, vector<2x256xf32> -> vector<2x256xf32>
      %139 = arith.addf %136, %138 : vector<2x256xf32>
      %140 = math.tanh %139 : vector<2x256xf32>
      %cst_84 = arith.constant 5.000000e-01 : f32
      %141 = vector.broadcast %cst_84 : f32 to vector<2x256xf32>
      %142 = arith.mulf %141, %140 : vector<2x256xf32>
      %cst_85 = arith.constant 5.000000e-01 : f32
      %143 = vector.broadcast %cst_85 : f32 to vector<2x256xf32>
      %144 = arith.addf %142, %143 : vector<2x256xf32>
      %145 = arith.select %23, %140, %144 : vector<2x256xi1>, vector<2x256xf32>
      %146 = vector.extract_strided_slice %145 {offsets = [0, 0], sizes = [2, 64], strides = [1, 1]} : vector<2x256xf32> to vector<2x64xf32>
      %147 = vector.extract_strided_slice %145 {offsets = [0, 64], sizes = [2, 64], strides = [1, 1]} : vector<2x256xf32> to vector<2x64xf32>
      %148 = vector.extract_strided_slice %145 {offsets = [0, 128], sizes = [2, 64], strides = [1, 1]} : vector<2x256xf32> to vector<2x64xf32>
      %149 = vector.extract_strided_slice %145 {offsets = [0, 192], sizes = [2, 64], strides = [1, 1]} : vector<2x256xf32> to vector<2x64xf32>
      %150 = arith.mulf %147, %arg8 : vector<2x64xf32>
      %151 = arith.mulf %146, %148 : vector<2x64xf32>
      %152 = arith.addf %150, %151 : vector<2x64xf32>
      %153 = math.tanh %152 : vector<2x64xf32>
      %154 = arith.mulf %149, %153 : vector<2x64xf32>
      %155 = arith.index_cast %arg6 : i32 to index
      %c0_86 = arith.constant 0 : index
      %c0_87 = arith.constant 0 : index
      %156 = vector.load %arg4[%155, %c0_86, %c0_87] : memref<8x2x64xf32, #tpu.memory_space<vmem>>, vector<1x2x64xf32>
      %157 = vector.shape_cast %156 : vector<1x2x64xf32> to vector<2x64xf32>
      %158 = vector.shape_cast %154 : vector<2x64xf32> to vector<1x2x64xf32>
      tpu.vector_store %arg4[%155, %c0_86, %c0_87], %158 {strides = array<i32>} : memref<8x2x64xf32, #tpu.memory_space<vmem>>, vector<1x2x64xf32>,
      scf.yield %154, %152 : vector<2x64xf32>, vector<2x64xf32>
    }
    %c8_i32_32 = arith.constant 8 : i32
    %c0_33 = arith.constant 0 : index
    %c0_34 = arith.constant 0 : index
    %c0_35 = arith.constant 0 : index
    %86 = vector.load %arg4[%c0_33, %c0_34, %c0_35] : memref<8x2x64xf32, #tpu.memory_space<vmem>>, vector<1x2x64xf32>
    %87 = vector.shape_cast %86 : vector<1x2x64xf32> to vector<2x64xf32>
    %c7_36 = arith.constant 7 : index
    %c0_37 = arith.constant 0 : index
    %c0_38 = arith.constant 0 : index
    %88 = vector.load %arg4[%c7_36, %c0_37, %c0_38] : memref<8x2x64xf32, #tpu.memory_space<vmem>>, vector<1x2x64xf32>
    %89 = vector.shape_cast %88 : vector<1x2x64xf32> to vector<2x64xf32>
    %90 = arith.select %26, %87, %89 : vector<2x64xi1>, vector<2x64xf32>
    %c0_39 = arith.constant 0 : index
    %c0_40 = arith.constant 0 : index
    %c0_41 = arith.constant 0 : index
    %91 = vector.load %arg4[%c0_39, %c0_40, %c0_41] : memref<8x2x64xf32, #tpu.memory_space<vmem>>, vector<1x2x64xf32>
    %92 = vector.shape_cast %91 : vector<1x2x64xf32> to vector<2x64xf32>
    %93 = vector.shape_cast %90 : vector<2x64xf32> to vector<1x2x64xf32>
    tpu.vector_store %arg4[%c0_39, %c0_40, %c0_41], %93 {strides = array<i32>} : memref<8x2x64xf32, #tpu.memory_space<vmem>>, vector<1x2x64xf32>,
    %94 = arith.select %26, %89, %87 : vector<2x64xi1>, vector<2x64xf32>
    %c7_42 = arith.constant 7 : index
    %c0_43 = arith.constant 0 : index
    %c0_44 = arith.constant 0 : index
    %95 = vector.load %arg4[%c7_42, %c0_43, %c0_44] : memref<8x2x64xf32, #tpu.memory_space<vmem>>, vector<1x2x64xf32>
    %96 = vector.shape_cast %95 : vector<1x2x64xf32> to vector<2x64xf32>
    %97 = vector.shape_cast %94 : vector<2x64xf32> to vector<1x2x64xf32>
    tpu.vector_store %arg4[%c7_42, %c0_43, %c0_44], %97 {strides = array<i32>} : memref<8x2x64xf32, #tpu.memory_space<vmem>>, vector<1x2x64xf32>,
    %c1_45 = arith.constant 1 : index
    %c0_46 = arith.constant 0 : index
    %c0_47 = arith.constant 0 : index
    %98 = vector.load %arg4[%c1_45, %c0_46, %c0_47] : memref<8x2x64xf32, #tpu.memory_space<vmem>>, vector<1x2x64xf32>
    %99 = vector.shape_cast %98 : vector<1x2x64xf32> to vector<2x64xf32>
    %c6_48 = arith.constant 6 : index
    %c0_49 = arith.constant 0 : index
    %c0_50 = arith.constant 0 : index
    %100 = vector.load %arg4[%c6_48, %c0_49, %c0_50] : memref<8x2x64xf32, #tpu.memory_space<vmem>>, vector<1x2x64xf32>
    %101 = vector.shape_cast %100 : vector<1x2x64xf32> to vector<2x64xf32>
    %102 = arith.select %26, %99, %101 : vector<2x64xi1>, vector<2x64xf32>
    %c1_51 = arith.constant 1 : index
    %c0_52 = arith.constant 0 : index
    %c0_53 = arith.constant 0 : index
    %103 = vector.load %arg4[%c1_51, %c0_52, %c0_53] : memref<8x2x64xf32, #tpu.memory_space<vmem>>, vector<1x2x64xf32>
    %104 = vector.shape_cast %103 : vector<1x2x64xf32> to vector<2x64xf32>
    %105 = vector.shape_cast %102 : vector<2x64xf32> to vector<1x2x64xf32>
    tpu.vector_store %arg4[%c1_51, %c0_52, %c0_53], %105 {strides = array<i32>} : memref<8x2x64xf32, #tpu.memory_space<vmem>>, vector<1x2x64xf32>,
    %106 = arith.select %26, %101, %99 : vector<2x64xi1>, vector<2x64xf32>
    %c6_54 = arith.constant 6 : index
    %c0_55 = arith.constant 0 : index
    %c0_56 = arith.constant 0 : index
    %107 = vector.load %arg4[%c6_54, %c0_55, %c0_56] : memref<8x2x64xf32, #tpu.memory_space<vmem>>, vector<1x2x64xf32>
    %108 = vector.shape_cast %107 : vector<1x2x64xf32> to vector<2x64xf32>
    %109 = vector.shape_cast %106 : vector<2x64xf32> to vector<1x2x64xf32>
    tpu.vector_store %arg4[%c6_54, %c0_55, %c0_56], %109 {strides = array<i32>} : memref<8x2x64xf32, #tpu.memory_space<vmem>>, vector<1x2x64xf32>,
    %c2_57 = arith.constant 2 : index
    %c0_58 = arith.constant 0 : index
    %c0_59 = arith.constant 0 : index
    %110 = vector.load %arg4[%c2_57, %c0_58, %c0_59] : memref<8x2x64xf32, #tpu.memory_space<vmem>>, vector<1x2x64xf32>
    %111 = vector.shape_cast %110 : vector<1x2x64xf32> to vector<2x64xf32>
    %c5_60 = arith.constant 5 : index
    %c0_61 = arith.constant 0 : index
    %c0_62 = arith.constant 0 : index
    %112 = vector.load %arg4[%c5_60, %c0_61, %c0_62] : memref<8x2x64xf32, #tpu.memory_space<vmem>>, vector<1x2x64xf32>
    %113 = vector.shape_cast %112 : vector<1x2x64xf32> to vector<2x64xf32>
    %114 = arith.select %26, %111, %113 : vector<2x64xi1>, vector<2x64xf32>
    %c2_63 = arith.constant 2 : index
    %c0_64 = arith.constant 0 : index
    %c0_65 = arith.constant 0 : index
    %115 = vector.load %arg4[%c2_63, %c0_64, %c0_65] : memref<8x2x64xf32, #tpu.memory_space<vmem>>, vector<1x2x64xf32>
    %116 = vector.shape_cast %115 : vector<1x2x64xf32> to vector<2x64xf32>
    %117 = vector.shape_cast %114 : vector<2x64xf32> to vector<1x2x64xf32>
    tpu.vector_store %arg4[%c2_63, %c0_64, %c0_65], %117 {strides = array<i32>} : memref<8x2x64xf32, #tpu.memory_space<vmem>>, vector<1x2x64xf32>,
    %118 = arith.select %26, %113, %111 : vector<2x64xi1>, vector<2x64xf32>
    %c5_66 = arith.constant 5 : index
    %c0_67 = arith.constant 0 : index
    %c0_68 = arith.constant 0 : index
    %119 = vector.load %arg4[%c5_66, %c0_67, %c0_68] : memref<8x2x64xf32, #tpu.memory_space<vmem>>, vector<1x2x64xf32>
    %120 = vector.shape_cast %119 : vector<1x2x64xf32> to vector<2x64xf32>
    %121 = vector.shape_cast %118 : vector<2x64xf32> to vector<1x2x64xf32>
    tpu.vector_store %arg4[%c5_66, %c0_67, %c0_68], %121 {strides = array<i32>} : memref<8x2x64xf32, #tpu.memory_space<vmem>>, vector<1x2x64xf32>,
    %c3_69 = arith.constant 3 : index
    %c0_70 = arith.constant 0 : index
    %c0_71 = arith.constant 0 : index
    %122 = vector.load %arg4[%c3_69, %c0_70, %c0_71] : memref<8x2x64xf32, #tpu.memory_space<vmem>>, vector<1x2x64xf32>
    %123 = vector.shape_cast %122 : vector<1x2x64xf32> to vector<2x64xf32>
    %c4_72 = arith.constant 4 : index
    %c0_73 = arith.constant 0 : index
    %c0_74 = arith.constant 0 : index
    %124 = vector.load %arg4[%c4_72, %c0_73, %c0_74] : memref<8x2x64xf32, #tpu.memory_space<vmem>>, vector<1x2x64xf32>
    %125 = vector.shape_cast %124 : vector<1x2x64xf32> to vector<2x64xf32>
    %126 = arith.select %26, %123, %125 : vector<2x64xi1>, vector<2x64xf32>
    %c3_75 = arith.constant 3 : index
    %c0_76 = arith.constant 0 : index
    %c0_77 = arith.constant 0 : index
    %127 = vector.load %arg4[%c3_75, %c0_76, %c0_77] : memref<8x2x64xf32, #tpu.memory_space<vmem>>, vector<1x2x64xf32>
    %128 = vector.shape_cast %127 : vector<1x2x64xf32> to vector<2x64xf32>
    %129 = vector.shape_cast %126 : vector<2x64xf32> to vector<1x2x64xf32>
    tpu.vector_store %arg4[%c3_75, %c0_76, %c0_77], %129 {strides = array<i32>} : memref<8x2x64xf32, #tpu.memory_space<vmem>>, vector<1x2x64xf32>,
    %130 = arith.select %26, %125, %123 : vector<2x64xi1>, vector<2x64xf32>
    %c4_78 = arith.constant 4 : index
    %c0_79 = arith.constant 0 : index
    %c0_80 = arith.constant 0 : index
    %131 = vector.load %arg4[%c4_78, %c0_79, %c0_80] : memref<8x2x64xf32, #tpu.memory_space<vmem>>, vector<1x2x64xf32>
    %132 = vector.shape_cast %131 : vector<1x2x64xf32> to vector<2x64xf32>
    %133 = vector.shape_cast %130 : vector<2x64xf32> to vector<1x2x64xf32>
    tpu.vector_store %arg4[%c4_78, %c0_79, %c0_80], %133 {strides = array<i32>} : memref<8x2x64xf32, #tpu.memory_space<vmem>>, vector<1x2x64xf32>,
    return
  }
}

</mosaic_0001>

<bundles_post_ra>
// kernel: encoder_forward.3
= control target key start
LH: loop header
LB: loop body
LE: loop exit
PB: predicated region body
PF: predicated region fallthrough
CT: control target
= control target key end

     0   :  { %s223_s16 = smov 112   ;;  %s224_s17 = smov 80   ;;  %vm50_vm0 = vcmask 392192   ;;  %s275_s0 = inlined_call_operand.vmem [shape: bf16[16,128], index: 0, kind: input, shape index: {}]   ;;  %s276_s1 = inlined_call_operand.vmem [shape: bf16[48,128], index: 1, kind: input, shape index: {}]   ;;  %s277_s2 = inlined_call_operand.vmem [shape: f32[1,128], index: 2, kind: input, shape index: {}]   ;;  %s278_s3 = inlined_call_operand.vmem [shape: f32[16,128], index: 3, kind: output, shape index: {}]  }
   0x1   :  { %v216_v0 = vld [vmem:[%s275_s0] sm:$0xff]  ;;  %v215_v1 = vld [vmem:[%s276_s1 + $0x10] sm:$0xff]  ;;  %s225_s18 = smov 48   ;;  %v214_v2 = vld [vmem:[%s276_s1 + $0x8] sm:$0xff]  ;;  %s226_s22 = smov 96  }
   0x2   :  { %70 = vrot.lane.b32.xlu0 %v216_v0, %s223_s16  ;;  %116 = vrot.lane.b32.xlu1 %v216_v0, %s224_s17  ;;  %v213_v3 = vld [vmem:[%s276_s1] sm:$0xff]  ;;  %s227_s23 = smov 64  }
   0x3   :  { %162 = vrot.lane.b32.xlu2 %v216_v0, %s225_s18  ;;  %59 = vmatpush.bf16.msra.mxu0 %v215_v1  ;;  %v222_v12 = vld [vmem:[%s277_s2] ss:$0 sm:$0xff] }
   0x4   :  { %80 = vmatpush.bf16.msra.mxu1 %v215_v1  ;;  %126 = vmatpush.bf16.msra.mxu3 %v215_v1 }
   0x5   :  { %103 = vmatpush.bf16.msra.mxu2 %v215_v1 }
   0x7   :  { %60 = vmatpush.bf16.msra.mxu0 %v214_v2 }
   0x8   :  { %81 = vmatpush.bf16.msra.mxu1 %v214_v2  ;;  %127 = vmatpush.bf16.msra.mxu3 %v214_v2 }
   0x9   :  { %104 = vmatpush.bf16.msra.mxu2 %v214_v2 }
   0xa   :  { %93 = vrot.lane.b32.xlu0 %v216_v0, %s226_s22  ;;  %139 = vrot.lane.b32.xlu1 %v216_v0, %s227_s23 }
   0xb   :  { %61 = vmatpush.bf16.msra.mxu0 %v213_v3 }
   0xc   :  { %82 = vmatpush.bf16.msra.mxu1 %v213_v3  ;;  %128 = vmatpush.bf16.msra.mxu3 %v213_v3 }
   0xd   :  { %105 = vmatpush.bf16.msra.mxu2 %v213_v3 }
   0xe   :  { %207 = vmatmul.msk.bf16.vlgmr.msra.gmra.mxu0 %vm50_vm0, %v216_v0 }
   0xf   :  { %149 = vmatpush.bf16.msrb.mxu0 %v215_v1 }
  0x10   :  { %172 = vmatpush.bf16.msrb.mxu1 %v215_v1 }
  0x13   :  { %150 = vmatpush.bf16.msrb.mxu0 %v214_v2 }
  0x14   :  { %173 = vmatpush.bf16.msrb.mxu1 %v214_v2 }
  0x17   :  { %151 = vmatpush.bf16.msrb.mxu0 %v213_v3 }
  0x18   :  { %174 = vmatpush.bf16.msrb.mxu1 %v213_v3 }
  0x5d   :  { %v163_v8 = vpop.permute.xlu2 %162 }
  0x74   :  { %v71_v4 = vpop.permute.xlu0 %70  ;;  %v117_v5 = vpop.permute.xlu1 %116 }
  0x75   :  { %208 = vmatmul.msk.bf16.vlgmr.msra.gmra.mxu1 %vm50_vm0, %v71_v4  ;;  %210 = vmatmul.msk.bf16.vlgmr.msra.gmra.mxu3 %vm50_vm0, %v117_v5 }
  0x7c   :  { %v94_v6 = vpop.permute.xlu0 %93  ;;  %v140_v7 = vpop.permute.xlu1 %139 }
  0x7d   :  { %209 = vmatmul.msk.bf16.vlgmr.msra.gmra.mxu2 %vm50_vm0, %v94_v6  ;;  %211 = vmatmul.msk.bf16.vlgmr.msrb.gmra.mxu0 %vm50_vm0, %v140_v7 }
  0x85   :  { %212 = vmatmul.msk.bf16.vlgmr.msrb.gmra.mxu1 %vm50_vm0, %v163_v8 }
  0x8b   :  { %v63_v9 = vpop.f32.mrf.mxu0 }
  0x8c   :  { %v64_v13 = vadd.f32 %v222_v12, %v63_v9 }
  0x8e   :  { %v68_v17 = vmax.f32 %v64_v13, 0.0 }
  0x93   :  { %v65_v11 = vpop.f32.mrf.mxu0 }
  0x94   :  { %v66_v30 = vadd.f32 %v222_v12, %v65_v11 }
  0x96   :  { %v69_v39 = vmax.f32 %v66_v30, 0.0 }
  0xf2   :  { %v84_v10 = vpop.f32.mrf.mxu1 }
  0xf3   :  { %v85_v14 = vadd.f32 %v222_v12, %v84_v10 }
  0xf5   :  { %v89_v18 = vmax.f32 %v85_v14, 0.0 }
  0xf7   :  { %v91_v24 = vmax.f32 %v68_v17, %v89_v18 }
  0xf8   :  { %v130_v16 = vpop.f32.mrf.mxu3 }
  0xf9   :  { %v131_v20 = vadd.f32 %v222_v12, %v130_v16 }
  0xfa   :  { %v86_v15 = vpop.f32.mrf.mxu1  ;;  %v153_v19 = vpop.f32.mrf.mxu0 }
  0xfb   :  { %v154_v22 = vadd.f32 %v222_v12, %v153_v19  ;;  %v87_v26 = vadd.f32 %v222_v12, %v86_v15  ;;  %v135_v27 = vmax.f32 %v131_v20, 0.0 }
  0xfd   :  { %v158_v31 = vmax.f32 %v154_v22, 0.0  ;;  %v90_v34 = vmax.f32 %v87_v26, 0.0 }
  0xff   :  { %v92_v44 = vmax.f32 %v69_v39, %v90_v34 }
 0x100   :  { %v107_v21 = vpop.f32.mrf.mxu2  ;;  %v132_v33 = vpop.f32.mrf.mxu3 }
 0x101   :  { %v108_v23 = vadd.f32 %v222_v12, %v107_v21  ;;  %v133_v40 = vadd.f32 %v222_v12, %v132_v33 }
 0x102   :  { %v176_v25 = vpop.f32.mrf.mxu1  ;;  %v155_v37 = vpop.f32.mrf.mxu0 }
 0x103   :  { %v112_v28 = vmax.f32 %v108_v23, 0.0  ;;  %v177_v29 = vadd.f32 %v222_v12, %v176_v25  ;;  %v156_v46 = vadd.f32 %v222_v12, %v155_v37  ;;  %v136_v48 = vmax.f32 %v133_v40, 0.0 }
 0x105   :  { %v114_v32 = vmax.f32 %v91_v24, %v112_v28  ;;  %v181_v36 = vmax.f32 %v177_v29, 0.0  ;;  %v159_v51 = vmax.f32 %v156_v46, 0.0 }
 0x107   :  { %v137_v35 = vmax.f32 %v114_v32, %v135_v27 }
 0x108   :  { %v109_v38 = vpop.f32.mrf.mxu2 }
 0x109   :  { %v160_v41 = vmax.f32 %v137_v35, %v158_v31  ;;  %v110_v42 = vadd.f32 %v222_v12, %v109_v38 }
 0x10a   :  { %v178_v43 = vpop.f32.mrf.mxu1 }
 0x10b   :  { %v183_v45 = vmax.f32 %v160_v41, %v181_v36  ;;  %v113_v47 = vmax.f32 %v110_v42, 0.0  ;;  %v179_v50 = vadd.f32 %v222_v12, %v178_v43 }
 0x10d   :  { %185 = vst [vmem:[%s278_s3] sm:$0xff] %v183_v45  ;;  %v115_v49 = vmax.f32 %v92_v44, %v113_v47  ;;  %v182_v54 = vmax.f32 %v179_v50, 0.0 }
 0x10f   :  { %v138_v52 = vmax.f32 %v115_v49, %v136_v48 }
 0x111   :  { %v161_v53 = vmax.f32 %v138_v52, %v159_v51 }
 0x113   :  { %v184_v55 = vmax.f32 %v161_v53, %v182_v54 }
 0x115   :  { %186 = vst [vmem:[%s278_s3 + $0x8] sm:$0xff] %v184_v55 }

// kernel: encoder_forward.5
= control target key start
LH: loop header
LB: loop body
LE: loop exit
PB: predicated region body
PF: predicated region fallthrough
CT: control target
= control target key end

     0   :  { %vm115_vm0 = vcmask 523264   ;;  %v18_v25 = vlaneseq  ;;  %vm158_vm5 = vcmask 1041408   ;;  %s778_s25 = smov 0   ;;  %s894_s1 = inlined_call_operand.vmem [shape: bf16[64,256], index: 1, kind: input, shape index: {}]   ;;  %s895_s4 = inlined_call_operand.vmem [shape: f32[8,2,64], index: 4, kind: output, shape index: {}]   ;;  %s896_s0 = inlined_call_operand.vmem [shape: bf16[16,64], index: 0, kind: input, shape index: {}]   ;;  %s897_s3 = inlined_call_operand.vmem [shape: f32[1,256], index: 3, kind: input, shape index: {}]   ;;  %s898_s2 = inlined_call_operand.vmem [shape: bf16[64,256], index: 2, kind: input, shape index: {}]  }
   0x1   :  { %v448_v0 = vld [vmem:[%s894_s1 + $0x30] sm:$0xf]  ;;  %v514_v1 = vld [vmem:[%s894_s1 + $0x34] sm:$0xf0]  ;;  %v513_v2 = vld [vmem:[%s894_s1 + $0x34] sm:$0xf] }
   0x2   :  { %v449_v3 = vor.u32 %v514_v1, %v448_v0  ;;  %v450_v4 = vld [vmem:[%s894_s1 + $0x38] sm:$0xf0]  ;;  %v440_v5 = vld [vmem:[%s894_s1 + $0x20] sm:$0xf]  ;;  %v512_v6 = vld [vmem:[%s894_s1 + $0x24] sm:$0xf0] }
   0x3   :  { %v453_v7 = vor.u32 %v513_v2, %v450_v4  ;;  %v511_v8 = vld [vmem:[%s894_s1 + $0x24] sm:$0xf]  ;;  %v442_v9 = vld [vmem:[%s894_s1 + $0x28] sm:$0xf0]  ;;  %v441_v10 = vor.u32 %v512_v6, %v440_v5  ;;  %v432_v12 = vld [vmem:[%s894_s1 + $0x10] sm:$0xf] }
   0x4   :  { %123 = vmatpush.bf16.msra.mxu0 %v449_v3  ;;  %v445_v11 = vor.u32 %v511_v8, %v442_v9  ;;  %v510_v13 = vld [vmem:[%s894_s1 + $0x14] sm:$0xf0]  ;;  %v509_v14 = vld [vmem:[%s894_s1 + $0x14] sm:$0xf]  ;;  %v434_v15 = vld [vmem:[%s894_s1 + $0x18] sm:$0xf0] }
   0x5   :  { %137 = vmatpush.bf16.msra.mxu1 %v453_v7  ;;  %v433_v16 = vor.u32 %v510_v13, %v432_v12  ;;  %v437_v17 = vor.u32 %v509_v14, %v434_v15  ;;  %v424_v18 = vld [vmem:[%s894_s1] sm:$0xf]  ;;  %v508_v19 = vld [vmem:[%s894_s1 + $0x4] sm:$0xf0]  ;;  %v507_v20 = vld [vmem:[%s894_s1 + $0x4] sm:$0xf] }
   0x6   :  { %v426_v21 = vld [vmem:[%s894_s1 + $0x8] sm:$0xf0]  ;;  %v425_v22 = vor.u32 %v508_v19, %v424_v18  ;;  %v506_v24 = vld [vmem:[%s896_s0] sm:$0xff]  ;;  %v656_v26 = vand.u32 127, %v18_v25  ;;  %v708_v3 = vld [vmem:[%s898_s2 + $0x4] sm:$0xf0] }
   0x7   :  { %v429_v23 = vor.u32 %v507_v20, %v426_v21  ;;  %v64_v28 = vld [vmem:[%s897_s3] sm:$0x3]  ;;  %v693_v63 = vld [vmem:[%s898_s2 + $0x4] sm:$0xf]  ;;  %v703_v1 = vld [vmem:[%s898_s2 + $0x8] sm:$0xf0] }
   0x8   :  { %124 = vmatpush.bf16.msra.mxu0 %v441_v10  ;;  %vm53_vm1 = vcmp.lt.s32.totalorder %v656_v26, 32  ;;  %v660_v27 = vadd.s32 128, %v656_v26  ;;  %v67_v31 = vperm.slane %v64_v28, 1  ;;  %v66_v32 = vperm.slane %v64_v28, 0  ;;  %v698_v0 = vld [vmem:[%s898_s2] sm:$0xf] }
   0x9   :  { %138 = vmatpush.bf16.msra.mxu1 %v445_v11  ;;  %v25_v36 = vand.u32 63, %v656_v26  ;;  %v713_v4 = vld [vmem:[%s898_s2 + $0x14] sm:$0xf]  ;;  %v720_v6 = vld [vmem:[%s898_s2 + $0x10] sm:$0xf]  ;;  %v774_v21 = vmov 0.0  }
   0xa   :  { %vm50_vm2 = vcmp.lt.s32.totalorder %v660_v27, 192  ;;  %v32_v33 = vand.u32 63, %v660_v27  ;;  %v725_v7 = vld [vmem:[%s898_s2 + $0x18] sm:$0xf0]  ;;  %v732_v9 = vld [vmem:[%s898_s2 + $0x14] sm:$0xf0] }
   0xb   :  { %vm672_vm4 = vcmp.lt.s32.totalorder %v25_v36, 32  ;;  %v737_v10 = vld [vmem:[%s898_s2 + $0x24] sm:$0xf]  ;;  %v742_v11 = vld [vmem:[%s898_s2 + $0x20] sm:$0xf] }
   0xc   :  { %125 = vmatpush.bf16.msra.mxu0 %v433_v16  ;;  %vm668_vm3 = vcmp.lt.s32.totalorder %v32_v33, 32  ;;  %v747_v12 = vld [vmem:[%s898_s2 + $0x28] sm:$0xf0]  ;;  %v752_v13 = vld [vmem:[%s898_s2 + $0x24] sm:$0xf0] }
   0xd   :  { %139 = vmatpush.bf16.msra.mxu1 %v437_v17  ;;  %v757_v14 = vld [vmem:[%s898_s2 + $0x34] sm:$0xf]  ;;  %v762_v15 = vld [vmem:[%s898_s2 + $0x30] sm:$0xf]  ;;  %v767_v16 = vld [vmem:[%s898_s2 + $0x38] sm:$0xf0] }
   0xe   :  { %v772_v17 = vld [vmem:[%s898_s2 + $0x34] sm:$0xf0] }
  0x10   :  { %126 = vmatpush.bf16.msra.mxu0 %v425_v22  ;;  %v776_v22 = vmov 0.0  }
  0x11   :  { %140 = vmatpush.bf16.msra.mxu1 %v429_v23 }
  0x13   :  { %454 = vmatmul.msk.bf16.vlgmr.msra.gmra.mxu0 %vm115_vm0, %v506_v24 }
  0x14   :  { %455 = vmatmul.msk.bf16.vlgmr.msra.gmra.mxu1 %vm115_vm0, %v506_v24 }
  0x90   :  { %v128_v29 = vpop.f32.mrf.mxu0 }
  0x91   :  { %v142_v30 = vpop.f32.mrf.mxu1  ;;  %v129_v35 = vadd.f32 %v128_v29, %v66_v32 }
  0x92   :  { %v143_v34 = vadd.f32 %v142_v30, %v67_v31 }
  0x93   :  { %v193_v43 = vrot.slane %v129_v35, 6  ;;  %v206_v61 = vrot.slane %v129_v35, 2 }
  0x94   :  { %v194_v41 = vrot.slane %v143_v34, 6  ;;  %v207_v62 = vrot.slane %v143_v34, 2 }
  0x98   :  { %v130_v37 = vpop.f32.mrf.mxu0 }
  0x99   :  { %v131_v38 = vadd.f32 %v130_v37, %v66_v32  ;;  %v144_v40 = vpop.f32.mrf.mxu1 }
  0x9a   :  { %v145_v42 = vadd.f32 %v144_v40, %v67_v31 }
  0x9b   :  { %v162_v45 = vrot.slane %v131_v38, 2  ;;  %v149_v46 = vrot.slane %v131_v38, 6  ;;  %v197_v52 = vsel %vm672_vm4, %v131_v38, %v193_v43  ;;  %v210_v5 = vsel %vm672_vm4, %v131_v38, %v206_v61 }
  0x9c   :  { %v150_v47 = vrot.slane %v145_v42, 6  ;;  %v163_v48 = vrot.slane %v145_v42, 2  ;;  %v198_v49 = vsel %vm668_vm3, %v145_v42, %v194_v41  ;;  %v211_v8 = vsel %vm668_vm3, %v145_v42, %v207_v62 }
  0x9d   :  { %v166_v50 = vsel %vm672_vm4, %v129_v35, %v162_v45  ;;  %v201_v51 = vrot.slane %v198_v49, 6  ;;  %v153_v57 = vsel %vm672_vm4, %v129_v35, %v149_v46 }
  0x9e   :  { %170 = vst.sshfl [vmem:[#allocation1] sm:$0xff pattern:$0x73625140] %v166_v50  ;;  %v154_v53 = vsel %vm668_vm3, %v143_v34, %v150_v47  ;;  %v167_v54 = vsel %vm668_vm3, %v143_v34, %v163_v48 }
  0x9f   :  { %v157_v55 = vrot.slane %v154_v53, 6  ;;  %171 = vst.sshfl [vmem:[#allocation1 + $0x8] sm:$0xff pattern:$0x73625140] %v167_v54  ;;  %v202_v56 = vsel %vm158_vm5, %v197_v52, %v201_v51 }
  0xa0   :  { %205 = vst [vmem:[#allocation2 + $0x10] sm:$0xf] %v202_v56 }
  0xa1   :  { %v159_v58 = vsel %vm158_vm5, %v153_v57, %v157_v55 }
  0xa2   :  { %161 = vst [vmem:[#allocation2] sm:$0xf] %v159_v58 }
  0xa6   :  { %v173_v59 = vld [vmem:[#allocation1 + $0x1] ss:$4 sm:$0xff] }
  0xa7   :  { %176 = vst [vmem:[#allocation2 + $0x4] sm:$0xf] %v173_v59 }
  0xa8   :  { %177 = vst.sshfl [vmem:[#allocation1] sm:$0xff pattern:$0x73625140] %v153_v57 }
  0xa9   :  { %178 = vst.sshfl [vmem:[#allocation1 + $0x8] sm:$0xff pattern:$0x73625140] %v154_v53 }
  0xb0   :  { %v180_v60 = vld [vmem:[#allocation1 + $0x2] ss:$4 sm:$0xff] }
  0xb1   :  { %183 = vst [vmem:[#allocation2 + $0x8] sm:$0xf] %v180_v60 }
  0xb2   :  { %184 = vst.sshfl [vmem:[#allocation1] sm:$0xff pattern:$0x73625140] %v166_v50 }
  0xb3   :  { %185 = vst.sshfl [vmem:[#allocation1 + $0x8] sm:$0xff pattern:$0x73625140] %v167_v54 }
  0xba   :  { %v187_v2 = vld [vmem:[#allocation1 + $0x3] ss:$4 sm:$0xff] }
  0xbb   :  { %190 = vst [vmem:[#allocation2 + $0xc] sm:$0xf] %v187_v2 }
  0xbc   :  { %214 = vst.sshfl [vmem:[#allocation1] sm:$0xff pattern:$0x73625140] %v210_v5 }
  0xbd   :  { %215 = vst.sshfl [vmem:[#allocation1 + $0x8] sm:$0xff pattern:$0x73625140] %v211_v8 }
  0xc4   :  { %v217_v18 = vld [vmem:[#allocation1 + $0x1] ss:$4 sm:$0xff] }
  0xc5   :  { %220 = vst [vmem:[#allocation2 + $0x14] sm:$0xf] %v217_v18 }
  0xc6   :  { %221 = vst.sshfl [vmem:[#allocation1] sm:$0xff pattern:$0x73625140] %v197_v52 }
  0xc7   :  { %222 = vst.sshfl [vmem:[#allocation1 + $0x8] sm:$0xff pattern:$0x73625140] %v198_v49 }
  0xce   :  { %v224_v19 = vld [vmem:[#allocation1 + $0x2] ss:$4 sm:$0xff] }
  0xcf   :  { %227 = vst [vmem:[#allocation2 + $0x18] sm:$0xf] %v224_v19 }
  0xd0   :  { %228 = vst.sshfl [vmem:[#allocation1] sm:$0xff pattern:$0x73625140] %v210_v5 }
  0xd1   :  { %229 = vst.sshfl [vmem:[#allocation1 + $0x8] sm:$0xff pattern:$0x73625140] %v211_v8 }
  0xd8   :  { %v231_v20 = vld [vmem:[#allocation1 + $0x3] ss:$4 sm:$0xff] }
  0xd9   :  { %234 = vst [vmem:[#allocation2 + $0x1c] sm:$0xf] %v231_v20 }
  0xda LB: > { %v485_v23 = vor.u32 %v772_v17, %v762_v15  ;;  %v489_v24 = vor.u32 %v757_v14, %v767_v16  ;;  %v255_v25 = vpack.c.bf16 %v571_v22, %v571_v22  ;;  %v477_v28 = vor.u32 %v752_v13, %v742_v11  ;;  %s577_s2 = smov 64   ;;  %s523_s26 = sshll.u32 %s575_s25, 2  ;;  %s575_s25 = sphi %s778_s25, %s248_s25   ;;  %v571_v22 = vphi %v776_v22, %v359_v22   ;;  %v567_v21 = vphi %v774_v21, %v357_v21  }
  0xdb   : > { %v481_v29 = vor.u32 %v737_v10, %v747_v12  ;;  %v469_v30 = vor.u32 %v732_v9, %v720_v6  ;;  %v473_v31 = vor.u32 %v713_v4, %v725_v7  ;;  %v461_v32 = vor.u32 %v708_v3, %v698_v0  ;;  %s253_s27 = scalar_lea.vmem [#allocation2], %s523_s26  ;;  %s456_s28 = sshll.u32 %s575_s25, 1 }
  0xdc   : > { %306 = vmatpush.bf16.msra.mxu0 %v485_v23  ;;  %319 = vmatpush.bf16.msra.mxu1 %v489_v24  ;;  %v465_v33 = vor.u32 %v693_v63, %v703_v1  ;;  %s364_s5 = scalar_lea.vmem %s895_s4, %s456_s28  ;;  %vm365_vm6 = vcmask 517120   ;;  %s248_s25 = sadd.s32 1, %s575_s25  }
  0xdd   : > { %257 = vrot.lane.b32.xlu0 %v255_v25, %s577_s2  ;;  %p245_p0 = scmp.ge.s32.totalorder %s248_s25, 8  }
  0xe0   : > { %307 = vmatpush.bf16.msra.mxu0 %v477_v28  ;;  %320 = vmatpush.bf16.msra.mxu1 %v481_v29  ;;  %v254_v37 = vld [vmem:[%s253_s27] sm:$0xf] }
  0xe4   : > { %308 = vmatpush.bf16.msra.mxu0 %v469_v30  ;;  %321 = vmatpush.bf16.msra.mxu1 %v473_v31 }
  0xe8   : > { %309 = vmatpush.bf16.msra.mxu0 %v461_v32  ;;  %322 = vmatpush.bf16.msra.mxu1 %v465_v33 }
 0x14f   : > { %v258_v34 = vpop.permute.xlu0 %257 }
 0x150   : > { %490 = vmatmul.msk.bf16.vlgmr.msra.gmra.mxu0 %vm115_vm0, %v258_v34  ;;  %491 = vmatmul.msk.bf16.vlgmr.msra.gmra.mxu1 %vm115_vm0, %v258_v34 }
 0x1cd   : > { %v311_v35 = vpop.f32.mrf.mxu0  ;;  %v324_v36 = vpop.f32.mrf.mxu1 }
 0x1ce   : > { %v330_v38 = vrot.slane %v324_v36, 6 }
 0x1d0   : > { %v331_v39 = vsel %vm158_vm5, %v311_v35, %v330_v38 }
 0x1d1   : > { %v333_v40 = vadd.f32 %v331_v39, %v254_v37 }
 0x1d3   : > { %549 = vtanh.f32 %v333_v40 }
 0x1d5   : > { %v313_v41 = vpop.f32.mrf.mxu0  ;;  %v326_v42 = vpop.f32.mrf.mxu1 }
 0x1d9   : > { %v550_v43 = vpop.eup %549 }
 0x1da   : > { %338 = vst [vmem:[#allocation1] ss:$4 sm:$0xff] %v550_v43  ;;  %v335_v44 = vmul.f32 0.5, %v550_v43 }
 0x1dc   : > { %v336_v45 = vadd.f32 0.5, %v335_v44 }
 0x1e1   : > { %v340_v46 = vld.sshfl [vmem:[#allocation1 + $0x8] sm:$0xff pattern:$0x73625140] }
 0x1e2   : > { %344 = vst [vmem:[#allocation1] ss:$4 sm:$0xff] %v336_v45 }
 0x1e9   : > { %v345_v47 = vld.sshfl [vmem:[#allocation1] sm:$0xff pattern:$0x73625140]  ;;  %v346_v48 = vld.sshfl [vmem:[#allocation1 + $0x8] sm:$0xff pattern:$0x73625140] }
 0x1ea   : > { %v350_v49 = vsel %vm50_vm2, %v340_v46, %v346_v48  ;;  %v351_v51 = vmul.f32 %v567_v21, %v345_v47 }
 0x1eb   : > { %v352_v50 = vmul.f32 %v350_v49, %v345_v47 }
 0x1ed   : > { %354 = vrot.lane.b32.xlu0 %v352_v50, %s577_s2 }
 0x25f   : > { %v355_v52 = vpop.permute.xlu0 %354 }
 0x260   : > { %v357_v21 = vadd.f32 %v355_v52, %v351_v51  }
 0x262   : > { %551 = vtanh.f32 %v357_v21 }
 0x268   : > { %v552_v53 = vpop.eup %551 }
 0x269   : > { %v359_v22 = vmul.f32 %v552_v53, %v350_v49  }
 0x26b   : > { %361 = vrot.lane.b32.xlu1 %v359_v22, %s577_s2 }
 0x2da   :  { %247 = sbr.rel (!%p245_p0) target bundleno = 218 (0xda), region = 65 }
 0x2dd   : > { %v362_v54 = vpop.permute.xlu1 %361 }
 0x2de   : > { %366 = vst.msk [vmem:[%s364_s5] sm:$0x3] %vm365_vm6, %v362_v54 }
 0x2e5   :  { %v367_v55 = vld [vmem:[%s895_s4] sm:$0x3]  ;;  %v492_v56 = vld [vmem:[%s895_s4 + $0xe] sm:$0x3]  ;;  %v494_v57 = vld [vmem:[%s895_s4 + $0x2] sm:$0x3] }
 0x2e6   :  { %v370_v58 = vsel %vm53_vm1, %v367_v55, %v492_v56  ;;  %v373_v59 = vsel %vm53_vm1, %v492_v56, %v367_v55  ;;  %v495_v27 = vld [vmem:[%s895_s4 + $0xc] sm:$0x3]  ;;  %v498_v60 = vld [vmem:[%s895_s4 + $0x4] sm:$0x3]  ;;  %v499_v61 = vld [vmem:[%s895_s4 + $0xa] sm:$0x3] }
 0x2e7   :  { %372 = vst.msk [vmem:[%s895_s4] sm:$0x3] %vm365_vm6, %v370_v58  ;;  %v379_v62 = vsel %vm53_vm1, %v494_v57, %v495_v27  ;;  %v381_v63 = vsel %vm53_vm1, %v495_v27, %v494_v57  ;;  %v502_v0 = vld [vmem:[%s895_s4 + $0x6] sm:$0x3]  ;;  %v503_v1 = vld [vmem:[%s895_s4 + $0x8] sm:$0x3]  ;;  %v387_v2 = vsel %vm53_vm1, %v498_v60, %v499_v61  ;;  %v389_v3 = vsel %vm53_vm1, %v499_v61, %v498_v60 }
 0x2e8   :  { %493 = vst.msk [vmem:[%s895_s4 + $0xe] sm:$0x3] %vm365_vm6, %v373_v59  ;;  %v395_v4 = vsel %vm53_vm1, %v502_v0, %v503_v1  ;;  %v397_v5 = vsel %vm53_vm1, %v503_v1, %v502_v0 }
 0x2e9   :  { %496 = vst.msk [vmem:[%s895_s4 + $0x2] sm:$0x3] %vm365_vm6, %v379_v62 }
 0x2ea   :  { %497 = vst.msk [vmem:[%s895_s4 + $0xc] sm:$0x3] %vm365_vm6, %v381_v63 }
 0x2eb   :  { %500 = vst.msk [vmem:[%s895_s4 + $0x4] sm:$0x3] %vm365_vm6, %v387_v2 }
 0x2ec   :  { %501 = vst.msk [vmem:[%s895_s4 + $0xa] sm:$0x3] %vm365_vm6, %v389_v3 }
 0x2ed   :  { %504 = vst.msk [vmem:[%s895_s4 + $0x6] sm:$0x3] %vm365_vm6, %v395_v4 }
 0x2ee   :  { %505 = vst.msk [vmem:[%s895_s4 + $0x8] sm:$0x3] %vm365_vm6, %v397_v5 }

// kernel: encoder_forward.4
= control target key start
LH: loop header
LB: loop body
LE: loop exit
PB: predicated region body
PF: predicated region fallthrough
CT: control target
= control target key end

     0   :  { %vm724_vm4 = vcmask 1041408   ;;  %s2231_s17 = smov 0   ;;  %s2351_s1 = inlined_call_operand.vmem [shape: bf16[640,256], index: 1, kind: input, shape index: {}]   ;;  %s2352_s4 = inlined_call_operand.vmem [shape: bf16[8,2,64], index: 4, kind: output, shape index: {}]   ;;  %s2353_s0 = inlined_call_operand.vmem [shape: bf16[16,640], index: 0, kind: input, shape index: {}]   ;;  %s2354_s3 = inlined_call_operand.vmem [shape: f32[1,256], index: 3, kind: input, shape index: {}]   ;;  %s2355_s2 = inlined_call_operand.vmem [shape: bf16[64,256], index: 2, kind: input, shape index: {}]  }
   0x1   :  { %v1078_v0 = vld [vmem:[%s2351_s1 + $0x70] sm:$0xf]  ;;  %v1412_v1 = vld [vmem:[%s2351_s1 + $0x74] sm:$0xf0]  ;;  %v1070_v9 = vld [vmem:[%s2351_s1 + $0x60] sm:$0xf] }
   0x2   :  { %v1142_v2 = vld [vmem:[%s2351_s1 + $0xf0] sm:$0xf]  ;;  %v1079_v3 = vor.u32 %v1412_v1, %v1078_v0  ;;  %v1428_v4 = vld [vmem:[%s2351_s1 + $0xf4] sm:$0xf0]  ;;  %v1410_v10 = vld [vmem:[%s2351_s1 + $0x64] sm:$0xf0] }
   0x3   :  { %v1206_v5 = vld [vmem:[%s2351_s1 + $0x170] sm:$0xf]  ;;  %v1444_v6 = vld [vmem:[%s2351_s1 + $0x174] sm:$0xf0]  ;;  %v1143_v7 = vor.u32 %v1428_v4, %v1142_v2  ;;  %v1134_v11 = vld [vmem:[%s2351_s1 + $0xe0] sm:$0xf]  ;;  %v1071_v12 = vor.u32 %v1410_v10, %v1070_v9 }
   0x4   :  { %v1207_v8 = vor.u32 %v1444_v6, %v1206_v5  ;;  %573 = vmatpush.bf16.msra.mxu0 %v1079_v3  ;;  %v1426_v13 = vld [vmem:[%s2351_s1 + $0xe4] sm:$0xf0]  ;;  %v1270_v14 = vld [vmem:[%s2351_s1 + $0x1f0] sm:$0xf]  ;;  %v1460_v15 = vld [vmem:[%s2351_s1 + $0x1f4] sm:$0xf0] }
   0x5   :  { %587 = vmatpush.bf16.msra.mxu1 %v1143_v7  ;;  %v1135_v16 = vor.u32 %v1426_v13, %v1134_v11  ;;  %v1271_v17 = vor.u32 %v1460_v15, %v1270_v14  ;;  %v1198_v18 = vld [vmem:[%s2351_s1 + $0x160] sm:$0xf]  ;;  %v1442_v19 = vld [vmem:[%s2351_s1 + $0x164] sm:$0xf0]  ;;  %v1062_v20 = vld [vmem:[%s2351_s1 + $0x50] sm:$0xf] }
   0x6   :  { %601 = vmatpush.bf16.msra.mxu2 %v1207_v8  ;;  %v1199_v21 = vor.u32 %v1442_v19, %v1198_v18  ;;  %v1408_v22 = vld [vmem:[%s2351_s1 + $0x54] sm:$0xf0]  ;;  %v1126_v23 = vld [vmem:[%s2351_s1 + $0xd0] sm:$0xf]  ;;  %v1262_v25 = vld [vmem:[%s2351_s1 + $0x1e0] sm:$0xf] }
   0x7   :  { %v1424_v24 = vld [vmem:[%s2351_s1 + $0xd4] sm:$0xf0]  ;;  %615 = vmatpush.bf16.msra.mxu3 %v1271_v17  ;;  %v1458_v26 = vld [vmem:[%s2351_s1 + $0x1e4] sm:$0xf0]  ;;  %v1190_v27 = vld [vmem:[%s2351_s1 + $0x150] sm:$0xf]  ;;  %v1063_v28 = vor.u32 %v1408_v22, %v1062_v20 }
   0x8   :  { %574 = vmatpush.bf16.msra.mxu0 %v1071_v12  ;;  %v1263_v29 = vor.u32 %v1458_v26, %v1262_v25  ;;  %v1440_v30 = vld [vmem:[%s2351_s1 + $0x154] sm:$0xf0]  ;;  %v1054_v31 = vld [vmem:[%s2351_s1 + $0x40] sm:$0xf]  ;;  %v1406_v32 = vld [vmem:[%s2351_s1 + $0x44] sm:$0xf0]  ;;  %v1127_v33 = vor.u32 %v1424_v24, %v1126_v23 }
   0x9   :  { %588 = vmatpush.bf16.msra.mxu1 %v1135_v16  ;;  %v1191_v34 = vor.u32 %v1440_v30, %v1190_v27  ;;  %v1118_v35 = vld [vmem:[%s2351_s1 + $0xc0] sm:$0xf]  ;;  %v1422_v36 = vld [vmem:[%s2351_s1 + $0xc4] sm:$0xf0]  ;;  %v1254_v37 = vld [vmem:[%s2351_s1 + $0x1d0] sm:$0xf]  ;;  %v1055_v42 = vor.u32 %v1406_v32, %v1054_v31 }
   0xa   :  { %602 = vmatpush.bf16.msra.mxu2 %v1199_v21  ;;  %v1456_v38 = vld [vmem:[%s2351_s1 + $0x1d4] sm:$0xf0]  ;;  %v1182_v39 = vld [vmem:[%s2351_s1 + $0x140] sm:$0xf]  ;;  %v1438_v40 = vld [vmem:[%s2351_s1 + $0x144] sm:$0xf0]  ;;  %v1119_v45 = vor.u32 %v1422_v36, %v1118_v35 }
   0xb   :  { %616 = vmatpush.bf16.msra.mxu3 %v1263_v29  ;;  %v1255_v41 = vor.u32 %v1456_v38, %v1254_v37  ;;  %v1246_v43 = vld [vmem:[%s2351_s1 + $0x1c0] sm:$0xf]  ;;  %v1454_v44 = vld [vmem:[%s2351_s1 + $0x1c4] sm:$0xf0]  ;;  %v1183_v46 = vor.u32 %v1438_v40, %v1182_v39  ;;  %v1046_v47 = vld [vmem:[%s2351_s1 + $0x30] sm:$0xf] }
   0xc   :  { %575 = vmatpush.bf16.msra.mxu0 %v1063_v28  ;;  %v1404_v48 = vld [vmem:[%s2351_s1 + $0x34] sm:$0xf0]  ;;  %v1110_v49 = vld [vmem:[%s2351_s1 + $0xb0] sm:$0xf]  ;;  %v1247_v53 = vor.u32 %v1454_v44, %v1246_v43  ;;  %v1038_v59 = vld [vmem:[%s2351_s1 + $0x20] sm:$0xf] }
   0xd   :  { %589 = vmatpush.bf16.msra.mxu1 %v1127_v33  ;;  %v1420_v50 = vld [vmem:[%s2351_s1 + $0xb4] sm:$0xf0]  ;;  %v1174_v51 = vld [vmem:[%s2351_s1 + $0x130] sm:$0xf]  ;;  %v1047_v54 = vor.u32 %v1404_v48, %v1046_v47  ;;  %v1402_v60 = vld [vmem:[%s2351_s1 + $0x24] sm:$0xf0] }
   0xe   :  { %603 = vmatpush.bf16.msra.mxu2 %v1191_v34  ;;  %v1436_v52 = vld [vmem:[%s2351_s1 + $0x134] sm:$0xf0]  ;;  %v1238_v55 = vld [vmem:[%s2351_s1 + $0x1b0] sm:$0xf]  ;;  %v1111_v57 = vor.u32 %v1420_v50, %v1110_v49  ;;  %v1102_v61 = vld [vmem:[%s2351_s1 + $0xa0] sm:$0xf]  ;;  %v1039_v2 = vor.u32 %v1402_v60, %v1038_v59 }
   0xf   :  { %617 = vmatpush.bf16.msra.mxu3 %v1255_v41  ;;  %v1452_v56 = vld [vmem:[%s2351_s1 + $0x1b4] sm:$0xf0]  ;;  %v1175_v58 = vor.u32 %v1436_v52, %v1174_v51  ;;  %v1418_v62 = vld [vmem:[%s2351_s1 + $0xa4] sm:$0xf0]  ;;  %v1166_v63 = vld [vmem:[%s2351_s1 + $0x120] sm:$0xf] }
  0x10   :  { %576 = vmatpush.bf16.msra.mxu0 %v1055_v42  ;;  %v1434_v0 = vld [vmem:[%s2351_s1 + $0x124] sm:$0xf0]  ;;  %v1239_v1 = vor.u32 %v1452_v56, %v1238_v55  ;;  %v1230_v3 = vld [vmem:[%s2351_s1 + $0x1a0] sm:$0xf]  ;;  %v1103_v5 = vor.u32 %v1418_v62, %v1102_v61  ;;  %v1030_v7 = vld [vmem:[%s2351_s1 + $0x10] sm:$0xf] }
  0x11   :  { %590 = vmatpush.bf16.msra.mxu1 %v1119_v45  ;;  %v1450_v4 = vld [vmem:[%s2351_s1 + $0x1a4] sm:$0xf0]  ;;  %v1167_v6 = vor.u32 %v1434_v0, %v1166_v63  ;;  %v1400_v8 = vld [vmem:[%s2351_s1 + $0x14] sm:$0xf0]  ;;  %v1094_v9 = vld [vmem:[%s2351_s1 + $0x90] sm:$0xf] }
  0x12   :  { %604 = vmatpush.bf16.msra.mxu2 %v1183_v46  ;;  %v1416_v10 = vld [vmem:[%s2351_s1 + $0x94] sm:$0xf0]  ;;  %v1158_v11 = vld [vmem:[%s2351_s1 + $0x110] sm:$0xf]  ;;  %v1231_v13 = vor.u32 %v1450_v4, %v1230_v3  ;;  %v1022_v14 = vld [vmem:[%s2351_s1] sm:$0xf]  ;;  %v1031_v15 = vor.u32 %v1400_v8, %v1030_v7 }
  0x13   :  { %618 = vmatpush.bf16.msra.mxu3 %v1247_v53  ;;  %v1432_v12 = vld [vmem:[%s2351_s1 + $0x114] sm:$0xf0]  ;;  %v1398_v16 = vld [vmem:[%s2351_s1 + $0x4] sm:$0xf0]  ;;  %v1222_v17 = vld [vmem:[%s2351_s1 + $0x190] sm:$0xf]  ;;  %v1095_v19 = vor.u32 %v1416_v10, %v1094_v9 }
  0x14   :  { %577 = vmatpush.bf16.msra.mxu0 %v1047_v54  ;;  %v1448_v18 = vld [vmem:[%s2351_s1 + $0x194] sm:$0xf0]  ;;  %v1159_v20 = vor.u32 %v1432_v12, %v1158_v11  ;;  %v1086_v21 = vld [vmem:[%s2351_s1 + $0x80] sm:$0xf]  ;;  %v1414_v22 = vld [vmem:[%s2351_s1 + $0x84] sm:$0xf0]  ;;  %v1023_v31 = vor.u32 %v1398_v16, %v1022_v14 }
  0x15   :  { %591 = vmatpush.bf16.msra.mxu1 %v1111_v57  ;;  %v1334_v23 = vld [vmem:[%s2351_s1 + $0x270] sm:$0xf]  ;;  %v1476_v24 = vld [vmem:[%s2351_s1 + $0x274] sm:$0xf0]  ;;  %v1411_v25 = vld [vmem:[%s2351_s1 + $0x74] sm:$0xf]  ;;  %v1223_v27 = vor.u32 %v1448_v18, %v1222_v17  ;;  %v1087_v35 = vor.u32 %v1414_v22, %v1086_v21 }
  0x16   :  { %605 = vmatpush.bf16.msra.mxu2 %v1175_v58  ;;  %v1080_v26 = vld [vmem:[%s2351_s1 + $0x78] sm:$0xf0]  ;;  %v1150_v28 = vld [vmem:[%s2351_s1 + $0x100] sm:$0xf]  ;;  %v1430_v29 = vld [vmem:[%s2351_s1 + $0x104] sm:$0xf0]  ;;  %v1335_v36 = vor.u32 %v1476_v24, %v1334_v23 }
  0x17   :  { %619 = vmatpush.bf16.msra.mxu3 %v1239_v1  ;;  %v1427_v30 = vld [vmem:[%s2351_s1 + $0xf4] sm:$0xf]  ;;  %v1144_v32 = vld [vmem:[%s2351_s1 + $0xf8] sm:$0xf0]  ;;  %v1214_v33 = vld [vmem:[%s2351_s1 + $0x180] sm:$0xf]  ;;  %v1083_v39 = vor.u32 %v1411_v25, %v1080_v26  ;;  %v1151_v40 = vor.u32 %v1430_v29, %v1150_v28 }
  0x18   :  { %578 = vmatpush.bf16.msra.mxu0 %v1039_v2  ;;  %v1446_v34 = vld [vmem:[%s2351_s1 + $0x184] sm:$0xf0]  ;;  %v1443_v37 = vld [vmem:[%s2351_s1 + $0x174] sm:$0xf]  ;;  %v1208_v38 = vld [vmem:[%s2351_s1 + $0x178] sm:$0xf0]  ;;  %v1147_v43 = vor.u32 %v1427_v30, %v1144_v32 }
  0x19   :  { %592 = vmatpush.bf16.msra.mxu1 %v1103_v5  ;;  %v1326_v41 = vld [vmem:[%s2351_s1 + $0x260] sm:$0xf]  ;;  %v1474_v42 = vld [vmem:[%s2351_s1 + $0x264] sm:$0xf0]  ;;  %v1215_v44 = vor.u32 %v1446_v34, %v1214_v33  ;;  %v1409_v45 = vld [vmem:[%s2351_s1 + $0x64] sm:$0xf]  ;;  %v1211_v48 = vor.u32 %v1443_v37, %v1208_v38 }
  0x1a   :  { %606 = vmatpush.bf16.msra.mxu2 %v1167_v6  ;;  %v1072_v46 = vld [vmem:[%s2351_s1 + $0x68] sm:$0xf0]  ;;  %v1002_v47 = vld [vmem:[%s2353_s0] sm:$0xf]  ;;  %v1425_v49 = vld [vmem:[%s2351_s1 + $0xe4] sm:$0xf]  ;;  %v1327_v52 = vor.u32 %v1474_v42, %v1326_v41 }
  0x1b   :  { %620 = vmatpush.bf16.msra.mxu3 %v1231_v13  ;;  %v1136_v50 = vld [vmem:[%s2351_s1 + $0xe8] sm:$0xf0]  ;;  %v1394_v51 = vld [vmem:[%s2353_s0 + $0x10] sm:$0xf0]  ;;  %v1318_v53 = vld [vmem:[%s2351_s1 + $0x250] sm:$0xf]  ;;  %v1075_v57 = vor.u32 %v1409_v45, %v1072_v46 }
  0x1c   :  { %579 = vmatpush.bf16.msra.mxu0 %v1031_v15  ;;  %v1441_v54 = vld [vmem:[%s2351_s1 + $0x164] sm:$0xf]  ;;  %v1200_v55 = vld [vmem:[%s2351_s1 + $0x168] sm:$0xf0]  ;;  %v1816_v56 = vor.u32 %v1394_v51, %v1002_v47  ;;  %v1472_v58 = vld [vmem:[%s2351_s1 + $0x254] sm:$0xf0]  ;;  %v1139_v61 = vor.u32 %v1425_v49, %v1136_v50 }
  0x1d   :  { %593 = vmatpush.bf16.msra.mxu1 %v1095_v19  ;;  %v1407_v59 = vld [vmem:[%s2351_s1 + $0x54] sm:$0xf]  ;;  %v1064_v60 = vld [vmem:[%s2351_s1 + $0x58] sm:$0xf0]  ;;  %v1010_v63 = vld [vmem:[%s2353_s0 + $0x8] sm:$0xf]  ;;  %v1203_v1 = vor.u32 %v1441_v54, %v1200_v55  ;;  %v1319_v6 = vor.u32 %v1472_v58, %v1318_v53 }
  0x1e   :  { %607 = vmatpush.bf16.msra.mxu2 %v1159_v20  ;;  %v1423_v62 = vld [vmem:[%s2351_s1 + $0xd4] sm:$0xf]  ;;  %v1395_v0 = vld [vmem:[%s2353_s0 + $0x18] sm:$0xf0]  ;;  %v1393_v4 = vld [vmem:[%s2353_s0 + $0xc] sm:$0xf]  ;;  %v1067_v10 = vor.u32 %v1407_v59, %v1064_v60 }
  0x1f   :  { %621 = vmatpush.bf16.msra.mxu3 %v1223_v27  ;;  %v1128_v2 = vld [vmem:[%s2351_s1 + $0xd8] sm:$0xf0]  ;;  %v1840_v3 = vor.u32 %v1395_v0, %v1010_v63  ;;  %v1012_v5 = vld [vmem:[%s2353_s0 + $0x1c] sm:$0xf0]  ;;  %v1439_v7 = vld [vmem:[%s2351_s1 + $0x154] sm:$0xf] }
  0x20   :  { %580 = vmatpush.bf16.msra.mxu0 %v1023_v31  ;;  %v1192_v8 = vld [vmem:[%s2351_s1 + $0x158] sm:$0xf0]  ;;  %v1854_v9 = vor.u32 %v1393_v4, %v1012_v5  ;;  %v1310_v11 = vld [vmem:[%s2351_s1 + $0x240] sm:$0xf]  ;;  %v1470_v12 = vld [vmem:[%s2351_s1 + $0x244] sm:$0xf0]  ;;  %v1131_v14 = vor.u32 %v1423_v62, %v1128_v2 }
  0x21   :  { %594 = vmatpush.bf16.msra.mxu1 %v1087_v35  ;;  %v1405_v13 = vld [vmem:[%s2351_s1 + $0x44] sm:$0xf]  ;;  %v1056_v15 = vld [vmem:[%s2351_s1 + $0x48] sm:$0xf0]  ;;  %v1004_v17 = vld [vmem:[%s2353_s0 + $0x14] sm:$0xf0]  ;;  %v1195_v18 = vor.u32 %v1439_v7, %v1192_v8  ;;  %v1311_v22 = vor.u32 %v1470_v12, %v1310_v11 }
  0x22   :  { %608 = vmatpush.bf16.msra.mxu2 %v1151_v40  ;;  %v1392_v16 = vld [vmem:[%s2353_s0 + $0x4] sm:$0xf]  ;;  %v1120_v20 = vld [vmem:[%s2351_s1 + $0xc8] sm:$0xf0]  ;;  %v1059_v25 = vor.u32 %v1405_v13, %v1056_v15  ;;  %v1302_v26 = vld [vmem:[%s2351_s1 + $0x230] sm:$0xf] }
  0x23   :  { %622 = vmatpush.bf16.msra.mxu3 %v1215_v44  ;;  %581 = vmatmul.bf16.vlgmr.msra.gmra.mxu0 %v1816_v56  ;;  %v1421_v19 = vld [vmem:[%s2351_s1 + $0xc4] sm:$0xf]  ;;  %v1882_v21 = vor.u32 %v1392_v16, %v1004_v17  ;;  %v1184_v24 = vld [vmem:[%s2351_s1 + $0x148] sm:$0xf0]  ;;  %v1468_v27 = vld [vmem:[%s2351_s1 + $0x234] sm:$0xf0] }
  0x24   :  { %629 = vmatpush.bf16.msrb.mxu0 %v1335_v36  ;;  %v1437_v23 = vld [vmem:[%s2351_s1 + $0x144] sm:$0xf]  ;;  %v1123_v28 = vor.u32 %v1421_v19, %v1120_v20  ;;  %v1403_v29 = vld [vmem:[%s2351_s1 + $0x34] sm:$0xf]  ;;  %v1048_v30 = vld [vmem:[%s2351_s1 + $0x38] sm:$0xf0]  ;;  %v1303_v34 = vor.u32 %v1468_v27, %v1302_v26 }
  0x25   :  { %643 = vmatpush.bf16.msrb.mxu1 %v1083_v39  ;;  %609 = vmatmul.bf16.vlgmr.msra.gmra.mxu2 %v1840_v3  ;;  %v1187_v31 = vor.u32 %v1437_v23, %v1184_v24  ;;  %v1419_v32 = vld [vmem:[%s2351_s1 + $0xb4] sm:$0xf]  ;;  %v1112_v33 = vld [vmem:[%s2351_s1 + $0xb8] sm:$0xf0]  ;;  %v1051_v37 = vor.u32 %v1403_v29, %v1048_v30  ;;  %v1294_v38 = vld [vmem:[%s2351_s1 + $0x220] sm:$0xf] }
  0x26   :  { %657 = vmatpush.bf16.msrb.mxu2 %v1147_v43  ;;  %623 = vmatmul.bf16.vlgmr.msra.gmra.mxu3 %v1854_v9  ;;  %v1435_v35 = vld [vmem:[%s2351_s1 + $0x134] sm:$0xf]  ;;  %v1176_v36 = vld [vmem:[%s2351_s1 + $0x138] sm:$0xf0]  ;;  %v1466_v39 = vld [vmem:[%s2351_s1 + $0x224] sm:$0xf0]  ;;  %v1115_v40 = vor.u32 %v1419_v32, %v1112_v33 }
  0x27   :  { %671 = vmatpush.bf16.msrb.mxu3 %v1211_v48  ;;  %595 = vmatmul.bf16.vlgmr.msra.gmra.mxu1 %v1882_v21  ;;  %v1401_v41 = vld [vmem:[%s2351_s1 + $0x24] sm:$0xf]  ;;  %v1040_v42 = vld [vmem:[%s2351_s1 + $0x28] sm:$0xf0]  ;;  %v1179_v43 = vor.u32 %v1435_v35, %v1176_v36  ;;  %v1295_v46 = vor.u32 %v1466_v39, %v1294_v38  ;;  %v1286_v50 = vld [vmem:[%s2351_s1 + $0x210] sm:$0xf] }
  0x28   :  { %630 = vmatpush.bf16.msrb.mxu0 %v1327_v52  ;;  %v1417_v44 = vld [vmem:[%s2351_s1 + $0xa4] sm:$0xf]  ;;  %v1104_v45 = vld [vmem:[%s2351_s1 + $0xa8] sm:$0xf0]  ;;  %v1043_v49 = vor.u32 %v1401_v41, %v1040_v42  ;;  %v1464_v51 = vld [vmem:[%s2351_s1 + $0x214] sm:$0xf0] }
  0x29   :  { %644 = vmatpush.bf16.msrb.mxu1 %v1075_v57  ;;  %v1433_v47 = vld [vmem:[%s2351_s1 + $0x124] sm:$0xf]  ;;  %v1168_v48 = vld [vmem:[%s2351_s1 + $0x128] sm:$0xf0]  ;;  %v1107_v52 = vor.u32 %v1417_v44, %v1104_v45  ;;  %v1399_v53 = vld [vmem:[%s2351_s1 + $0x14] sm:$0xf]  ;;  %v1287_v60 = vor.u32 %v1464_v51, %v1286_v50 }
  0x2a   :  { %658 = vmatpush.bf16.msrb.mxu2 %v1139_v61  ;;  %v1032_v54 = vld [vmem:[%s2351_s1 + $0x18] sm:$0xf0]  ;;  %v1171_v55 = vor.u32 %v1433_v47, %v1168_v48  ;;  %v1415_v57 = vld [vmem:[%s2351_s1 + $0x94] sm:$0xf]  ;;  %v1278_v59 = vld [vmem:[%s2351_s1 + $0x200] sm:$0xf] }
  0x2b   :  { %672 = vmatpush.bf16.msrb.mxu3 %v1203_v1  ;;  %v1096_v58 = vld [vmem:[%s2351_s1 + $0x98] sm:$0xf0]  ;;  %v1462_v61 = vld [vmem:[%s2351_s1 + $0x204] sm:$0xf0]  ;;  %v1431_v62 = vld [vmem:[%s2351_s1 + $0x114] sm:$0xf]  ;;  %v1035_v0 = vor.u32 %v1399_v53, %v1032_v54 }
  0x2c   :  { %631 = vmatpush.bf16.msrb.mxu0 %v1319_v6  ;;  %v1160_v63 = vld [vmem:[%s2351_s1 + $0x118] sm:$0xf0]  ;;  %v1397_v1 = vld [vmem:[%s2351_s1 + $0x4] sm:$0xf]  ;;  %v1024_v2 = vld [vmem:[%s2351_s1 + $0x8] sm:$0xf0]  ;;  %v1099_v5 = vor.u32 %v1415_v57, %v1096_v58 }
  0x2d   :  { %645 = vmatpush.bf16.msrb.mxu1 %v1067_v10  ;;  %v1459_v4 = vld [vmem:[%s2351_s1 + $0x1f4] sm:$0xf]  ;;  %v1272_v6 = vld [vmem:[%s2351_s1 + $0x1f8] sm:$0xf0]  ;;  %v1163_v10 = vor.u32 %v1431_v62, %v1160_v63  ;;  %v1018_v11 = vld [vmem:[%s2353_s0 + $0x10] sm:$0xf] }
  0x2e   :  { %659 = vmatpush.bf16.msrb.mxu2 %v1131_v14  ;;  %v1475_v7 = vld [vmem:[%s2351_s1 + $0x274] sm:$0xf]  ;;  %v1336_v8 = vld [vmem:[%s2351_s1 + $0x278] sm:$0xf0]  ;;  %v1413_v12 = vld [vmem:[%s2351_s1 + $0x84] sm:$0xf]  ;;  %v1279_v14 = vor.u32 %v1462_v61, %v1278_v59  ;;  %v1275_v19 = vor.u32 %v1459_v4, %v1272_v6 }
  0x2f   :  { %673 = vmatpush.bf16.msrb.mxu3 %v1195_v18  ;;  %v1088_v13 = vld [vmem:[%s2351_s1 + $0x88] sm:$0xf0]  ;;  %v1396_v15 = vld [vmem:[%s2353_s0 + $0x20] sm:$0xf0]  ;;  %v1027_v18 = vor.u32 %v1397_v1, %v1024_v2  ;;  %v1339_v20 = vor.u32 %v1475_v7, %v1336_v8  ;;  %v1256_v32 = vld [vmem:[%s2351_s1 + $0x1d8] sm:$0xf0]  ;;  %v19_v1 = vlaneseq }
  0x30   :  { %632 = vmatpush.bf16.msrb.mxu0 %v1311_v22  ;;  %v1429_v16 = vld [vmem:[%s2351_s1 + $0x104] sm:$0xf]  ;;  %v1152_v17 = vld [vmem:[%s2351_s1 + $0x108] sm:$0xf0]  ;;  %v1091_v22 = vor.u32 %v1413_v12, %v1088_v13  ;;  %v1471_v33 = vld [vmem:[%s2351_s1 + $0x254] sm:$0xf] }
  0x31   :  { %646 = vmatpush.bf16.msrb.mxu1 %v1059_v25  ;;  %v1457_v23 = vld [vmem:[%s2351_s1 + $0x1e4] sm:$0xf]  ;;  %v1264_v24 = vld [vmem:[%s2351_s1 + $0x1e8] sm:$0xf0]  ;;  %v2011_v25 = vor.u32 %v1396_v15, %v1018_v11  ;;  %v1155_v26 = vor.u32 %v1429_v16, %v1152_v17  ;;  %v1240_v41 = vld [vmem:[%s2351_s1 + $0x1b8] sm:$0xf0] }
  0x32   :  { %660 = vmatpush.bf16.msrb.mxu2 %v1123_v28  ;;  %v1473_v27 = vld [vmem:[%s2351_s1 + $0x264] sm:$0xf]  ;;  %v1328_v28 = vld [vmem:[%s2351_s1 + $0x268] sm:$0xf0]  ;;  %v1267_v29 = vor.u32 %v1457_v23, %v1264_v24  ;;  %v1467_v42 = vld [vmem:[%s2351_s1 + $0x234] sm:$0xf] }
  0x33   :  { %674 = vmatpush.bf16.msrb.mxu3 %v1187_v31  ;;  %v1331_v30 = vor.u32 %v1473_v27, %v1328_v28  ;;  %v1455_v31 = vld [vmem:[%s2351_s1 + $0x1d4] sm:$0xf]  ;;  %v1248_v38 = vld [vmem:[%s2351_s1 + $0x1c8] sm:$0xf0]  ;;  %v1465_v48 = vld [vmem:[%s2351_s1 + $0x224] sm:$0xf] }
  0x34   :  { %633 = vmatpush.bf16.msrb.mxu0 %v1303_v34  ;;  %v1320_v34 = vld [vmem:[%s2351_s1 + $0x258] sm:$0xf0]  ;;  %v1259_v35 = vor.u32 %v1455_v31, %v1256_v32  ;;  %v1232_v47 = vld [vmem:[%s2351_s1 + $0x1a8] sm:$0xf0]  ;;  %v1463_v54 = vld [vmem:[%s2351_s1 + $0x214] sm:$0xf] }
  0x35   :  { %647 = vmatpush.bf16.msrb.mxu1 %v1051_v37  ;;  %v1323_v36 = vor.u32 %v1471_v33, %v1320_v34  ;;  %v1453_v37 = vld [vmem:[%s2351_s1 + $0x1c4] sm:$0xf]  ;;  %v1224_v53 = vld [vmem:[%s2351_s1 + $0x198] sm:$0xf0]  ;;  %v1280_v62 = vld [vmem:[%s2351_s1 + $0x208] sm:$0xf0] }
  0x36   :  { %661 = vmatpush.bf16.msrb.mxu2 %v1115_v40  ;;  %v1251_v39 = vor.u32 %v1453_v37, %v1248_v38  ;;  %v1451_v40 = vld [vmem:[%s2351_s1 + $0x1b4] sm:$0xf]  ;;  %v1445_v59 = vld [vmem:[%s2351_s1 + $0x184] sm:$0xf]  ;;  %v2097_v2 = vand.u32 127, %v19_v1 }
  0x37   :  { %675 = vmatpush.bf16.msrb.mxu3 %v1179_v43  ;;  %v1304_v43 = vld [vmem:[%s2351_s1 + $0x238] sm:$0xf0]  ;;  %v1243_v44 = vor.u32 %v1451_v40, %v1240_v41  ;;  %v1461_v61 = vld [vmem:[%s2351_s1 + $0x204] sm:$0xf]  ;;  %v141_v6 = vld [vmem:[%s2354_s3] sm:$0x3] }
  0x38   :  { %634 = vmatpush.bf16.msrb.mxu0 %v1295_v46  ;;  %v1307_v45 = vor.u32 %v1467_v42, %v1304_v43  ;;  %v1449_v46 = vld [vmem:[%s2351_s1 + $0x1a4] sm:$0xf]  ;;  %vm54_vm0 = vcmp.lt.s32.totalorder %v2097_v2, 32  ;;  %v144_v33 = vperm.slane %v141_v6, 1 }
  0x39   :  { %648 = vmatpush.bf16.msrb.mxu1 %v1043_v49  ;;  %v1296_v49 = vld [vmem:[%s2351_s1 + $0x228] sm:$0xf0]  ;;  %v1235_v50 = vor.u32 %v1449_v46, %v1232_v47 }
  0x3a   :  { %662 = vmatpush.bf16.msrb.mxu2 %v1107_v52  ;;  %v1299_v51 = vor.u32 %v1465_v48, %v1296_v49  ;;  %v1447_v52 = vld [vmem:[%s2351_s1 + $0x194] sm:$0xf] }
  0x3b   :  { %676 = vmatpush.bf16.msrb.mxu3 %v1171_v55  ;;  %v1288_v55 = vld [vmem:[%s2351_s1 + $0x218] sm:$0xf0]  ;;  %v1227_v57 = vor.u32 %v1447_v52, %v1224_v53 }
  0x3c   :  { %635 = vmatpush.bf16.msrb.mxu0 %v1287_v60  ;;  %v1291_v58 = vor.u32 %v1463_v54, %v1288_v55  ;;  %v1216_v60 = vld [vmem:[%s2351_s1 + $0x188] sm:$0xf0] }
  0x3d   :  { %649 = vmatpush.bf16.msrb.mxu1 %v1035_v0  ;;  %v1219_v63 = vor.u32 %v1445_v59, %v1216_v60  ;;  %v1283_v0 = vor.u32 %v1461_v61, %v1280_v62 }
  0x3e   :  { %663 = vmatpush.bf16.msrb.mxu2 %v1099_v5 }
  0x3f   :  { %677 = vmatpush.bf16.msrb.mxu3 %v1163_v10  ;;  %v143_v10 = vperm.slane %v141_v6, 0 }
  0x40   :  { %636 = vmatpush.bf16.msrb.mxu0 %v1279_v14 }
  0x41   :  { %650 = vmatpush.bf16.msrb.mxu1 %v1027_v18 }
  0x42   :  { %664 = vmatpush.bf16.msrb.mxu2 %v1091_v22  ;;  %v2104_v22 = vadd.s32 128, %v2097_v2 }
  0x43   :  { %637 = vmatmul.bf16.vlgmr.msrb.gmra.mxu0 %v2011_v25  ;;  %678 = vmatpush.bf16.msrb.mxu3 %v1155_v26 }
  0x44   :  { %685 = vmatpush.bf16.msra.mxu0 %v1275_v19  ;;  %651 = vmatmul.bf16.vlgmr.msrb.gmra.mxu1 %v1816_v56  ;;  %v1469_v56 = vld [vmem:[%s2351_s1 + $0x244] sm:$0xf]  ;;  %vm51_vm1 = vcmp.lt.s32.totalorder %v2104_v22, 192 }
  0x45   :  { %699 = vmatpush.bf16.msra.mxu1 %v1339_v20  ;;  %665 = vmatmul.bf16.vlgmr.msrb.gmra.mxu2 %v1882_v21  ;;  %v1312_v21 = vld [vmem:[%s2351_s1 + $0x248] sm:$0xf0] }
  0x46   :  { %679 = vmatmul.bf16.vlgmr.msrb.gmra.mxu3 %v1840_v3  ;;  %v1315_v3 = vor.u32 %v1469_v56, %v1312_v21 }
  0x48   :  { %686 = vmatpush.bf16.msra.mxu0 %v1267_v29 }
  0x49   :  { %700 = vmatpush.bf16.msra.mxu1 %v1331_v30 }
  0x4c   :  { %687 = vmatpush.bf16.msra.mxu0 %v1259_v35 }
  0x4d   :  { %701 = vmatpush.bf16.msra.mxu1 %v1323_v36 }
  0x50   :  { %688 = vmatpush.bf16.msra.mxu0 %v1251_v39 }
  0x51   :  { %702 = vmatpush.bf16.msra.mxu1 %v1315_v3 }
  0x54   :  { %689 = vmatpush.bf16.msra.mxu0 %v1243_v44  ;;  %v33_v44 = vand.u32 63, %v2104_v22 }
  0x55   :  { %703 = vmatpush.bf16.msra.mxu1 %v1307_v45 }
  0x56   :  { %vm2121_vm3 = vcmp.lt.s32.totalorder %v33_v44, 32 }
  0x58   :  { %690 = vmatpush.bf16.msra.mxu0 %v1235_v50 }
  0x59   :  { %704 = vmatpush.bf16.msra.mxu1 %v1299_v51 }
  0x5c   :  { %691 = vmatpush.bf16.msra.mxu0 %v1227_v57 }
  0x5d   :  { %705 = vmatpush.bf16.msra.mxu1 %v1291_v58 }
  0x60   :  { %692 = vmatpush.bf16.msra.mxu0 %v1219_v63 }
  0x61   :  { %706 = vmatpush.bf16.msra.mxu1 %v1283_v0 }
  0x63   :  { %693 = vmatmul.bf16.vlgmr.msra.gmra.mxu0 %v1854_v9 }
  0x64   :  { %707 = vmatmul.bf16.vlgmr.msra.gmra.mxu1 %v2011_v25  ;;  %v26_v25 = vand.u32 63, %v2097_v2 }
  0x66   :  { %vm2113_vm2 = vcmp.lt.s32.totalorder %v26_v25, 32  ;;  %v2205_v25 = vld [vmem:[%s2355_s2 + $0x24] sm:$0xf0] }
  0xa0   :  { %v582_v4 = vpop.f32.mrf.mxu0 }
  0xa1   :  { %v583_v12 = vadd.f32 %v582_v4, %v143_v10 }
  0xa4   :  { %v596_v5 = vpop.f32.mrf.mxu1 }
  0xa5   :  { %v597_v14 = vadd.f32 %v596_v5, %v583_v12  ;;  %v2155_v12 = vld [vmem:[%s2355_s2 + $0x8] sm:$0xf0] }
  0xa8   :  { %v584_v7 = vpop.f32.mrf.mxu0  ;;  %v610_v8 = vpop.f32.mrf.mxu2 }
  0xa9   :  { %v624_v11 = vpop.f32.mrf.mxu3  ;;  %v585_v13 = vadd.f32 %v584_v7, %v143_v10  ;;  %v611_v18 = vadd.f32 %v610_v8, %v597_v14  ;;  %v2145_v10 = vld [vmem:[%s2355_s2 + $0x4] sm:$0xf]  ;;  %v2165_v14 = vld [vmem:[%s2355_s2 + $0x14] sm:$0xf] }
  0xab   :  { %v625_v23 = vadd.f32 %v624_v11, %v611_v18  ;;  %v2150_v11 = vld [vmem:[%s2355_s2] sm:$0xf] }
  0xac   :  { %v598_v9 = vpop.f32.mrf.mxu1 }
  0xad   :  { %v599_v15 = vadd.f32 %v598_v9, %v585_v13  ;;  %v2160_v9 = vld [vmem:[%s2355_s2 + $0x4] sm:$0xf0] }
  0xb0   :  { %v612_v17 = vpop.f32.mrf.mxu2 }
  0xb1   :  { %v613_v19 = vadd.f32 %v612_v17, %v599_v15  ;;  %v626_v20 = vpop.f32.mrf.mxu3  ;;  %v2178_v17 = vld [vmem:[%s2355_s2 + $0x18] sm:$0xf0] }
  0xb3   :  { %v627_v24 = vadd.f32 %v626_v20, %v613_v19  ;;  %v2185_v19 = vld [vmem:[%s2355_s2 + $0x14] sm:$0xf0]  ;;  %v2190_v20 = vld [vmem:[%s2355_s2 + $0x24] sm:$0xf] }
  0xc0   :  { %v638_v16 = vpop.f32.mrf.mxu0 }
  0xc1   :  { %v2110_v28 = vadd.f32 %v638_v16, %v625_v23  ;;  %v652_v30 = vpop.f32.mrf.mxu1  ;;  %v2173_v16 = vld [vmem:[%s2355_s2 + $0x10] sm:$0xf]  ;;  %v2195_v23 = vld [vmem:[%s2355_s2 + $0x20] sm:$0xf] }
  0xc2   :  { %v653_v35 = vadd.f32 %v652_v30, %v144_v33 }
  0xc3   :  { %v759_v51 = vrot.slane %v2110_v28, 6  ;;  %v772_v7 = vrot.slane %v2110_v28, 2 }
  0xc8   :  { %v640_v26 = vpop.f32.mrf.mxu0  ;;  %v666_v34 = vpop.f32.mrf.mxu2 }
  0xc9   :  { %v2108_v27 = vadd.f32 %v640_v26, %v627_v24  ;;  %v654_v36 = vpop.f32.mrf.mxu1  ;;  %v680_v37 = vpop.f32.mrf.mxu3  ;;  %v667_v38 = vadd.f32 %v666_v34, %v653_v35  ;;  %v2200_v24 = vld [vmem:[%s2355_s2 + $0x28] sm:$0xf0]  ;;  %v2210_v26 = vld [vmem:[%s2355_s2 + $0x34] sm:$0xf]  ;;  %v2229_v34 = vmov 0.0  }
  0xca   :  { %v655_v56 = vadd.f32 %v654_v36, %v144_v33  ;;  %v2227_v33 = vmov 0.0  }
  0xcb   :  { %v728_v29 = vrot.slane %v2108_v27, 2  ;;  %v681_v3 = vadd.f32 %v680_v37, %v667_v38  ;;  %v715_v54 = vrot.slane %v2108_v27, 6  ;;  %v763_v60 = vsel %vm2113_vm2, %v2108_v27, %v759_v51 }
  0xcc   :  { %v776_v15 = vsel %vm2113_vm2, %v2108_v27, %v772_v7  ;;  %v2215_v27 = vld [vmem:[%s2355_s2 + $0x30] sm:$0xf] }
  0xcd   :  { %v732_v32 = vsel %vm2113_vm2, %v2110_v28, %v728_v29  ;;  %v719_v1 = vsel %vm2113_vm2, %v2110_v28, %v715_v54  ;;  %v2220_v28 = vld [vmem:[%s2355_s2 + $0x38] sm:$0xf0]  ;;  %v2225_v29 = vld [vmem:[%s2355_s2 + $0x34] sm:$0xf0] }
  0xce   :  { %736 = vst.sshfl [vmem:[#allocation1] sm:$0xff pattern:$0x73625140] %v732_v32 }
  0xd0   :  { %v668_v21 = vpop.f32.mrf.mxu2 }
  0xd1   :  { %v669_v41 = vadd.f32 %v668_v21, %v655_v56  ;;  %v682_v43 = vpop.f32.mrf.mxu3 }
  0xd3   :  { %v683_v45 = vadd.f32 %v682_v43, %v669_v41 }
  0xe0   :  { %v694_v39 = vpop.f32.mrf.mxu0 }
  0xe1   :  { %v708_v40 = vpop.f32.mrf.mxu1  ;;  %v695_v42 = vadd.f32 %v694_v39, %v681_v3 }
  0xe3   :  { %v709_v46 = vadd.f32 %v708_v40, %v695_v42 }
  0xe5   :  { %v760_v52 = vrot.slane %v709_v46, 6  ;;  %v773_v8 = vrot.slane %v709_v46, 2 }
  0xe8   :  { %v696_v47 = vpop.f32.mrf.mxu0 }
  0xe9   :  { %v697_v48 = vadd.f32 %v696_v47, %v683_v45  ;;  %v710_v50 = vpop.f32.mrf.mxu1 }
  0xeb   :  { %v711_v53 = vadd.f32 %v710_v50, %v697_v48 }
  0xed   :  { %v716_v55 = vrot.slane %v711_v53, 6  ;;  %v729_v57 = vrot.slane %v711_v53, 2  ;;  %v764_v58 = vsel %vm2121_vm3, %v711_v53, %v760_v52  ;;  %v777_v18 = vsel %vm2121_vm3, %v711_v53, %v773_v8 }
  0xee   :  { %v767_v59 = vrot.slane %v764_v58, 6 }
  0xef   :  { %v720_v61 = vsel %vm2121_vm3, %v709_v46, %v716_v55  ;;  %v733_v62 = vsel %vm2121_vm3, %v709_v46, %v729_v57 }
  0xf0   :  { %v723_v63 = vrot.slane %v720_v61, 6  ;;  %737 = vst.sshfl [vmem:[#allocation1 + $0x8] sm:$0xff pattern:$0x73625140] %v733_v62  ;;  %v768_v0 = vsel %vm724_vm4, %v763_v60, %v767_v59 }
  0xf1   :  { %771 = vst [vmem:[#allocation2 + $0x10] sm:$0xf] %v768_v0 }
  0xf2   :  { %v725_v4 = vsel %vm724_vm4, %v719_v1, %v723_v63 }
  0xf3   :  { %727 = vst [vmem:[#allocation2] sm:$0xf] %v725_v4 }
  0xf7   :  { %v739_v5 = vld [vmem:[#allocation1 + $0x1] ss:$4 sm:$0xff] }
  0xf8   :  { %742 = vst [vmem:[#allocation2 + $0x4] sm:$0xf] %v739_v5 }
  0xf9   :  { %743 = vst.sshfl [vmem:[#allocation1] sm:$0xff pattern:$0x73625140] %v719_v1 }
  0xfa   :  { %744 = vst.sshfl [vmem:[#allocation1 + $0x8] sm:$0xff pattern:$0x73625140] %v720_v61 }
 0x101   :  { %v746_v6 = vld [vmem:[#allocation1 + $0x2] ss:$4 sm:$0xff] }
 0x102   :  { %749 = vst [vmem:[#allocation2 + $0x8] sm:$0xf] %v746_v6 }
 0x103   :  { %750 = vst.sshfl [vmem:[#allocation1] sm:$0xff pattern:$0x73625140] %v732_v32 }
 0x104   :  { %751 = vst.sshfl [vmem:[#allocation1 + $0x8] sm:$0xff pattern:$0x73625140] %v733_v62 }
 0x10b   :  { %v753_v13 = vld [vmem:[#allocation1 + $0x3] ss:$4 sm:$0xff] }
 0x10c   :  { %756 = vst [vmem:[#allocation2 + $0xc] sm:$0xf] %v753_v13 }
 0x10d   :  { %780 = vst.sshfl [vmem:[#allocation1] sm:$0xff pattern:$0x73625140] %v776_v15 }
 0x10e   :  { %781 = vst.sshfl [vmem:[#allocation1 + $0x8] sm:$0xff pattern:$0x73625140] %v777_v18 }
 0x115   :  { %v783_v30 = vld [vmem:[#allocation1 + $0x1] ss:$4 sm:$0xff] }
 0x116   :  { %786 = vst [vmem:[#allocation2 + $0x14] sm:$0xf] %v783_v30 }
 0x117   :  { %787 = vst.sshfl [vmem:[#allocation1] sm:$0xff pattern:$0x73625140] %v763_v60 }
 0x118   :  { %788 = vst.sshfl [vmem:[#allocation1 + $0x8] sm:$0xff pattern:$0x73625140] %v764_v58 }
 0x11f   :  { %v790_v31 = vld [vmem:[#allocation1 + $0x2] ss:$4 sm:$0xff] }
 0x120   :  { %793 = vst [vmem:[#allocation2 + $0x18] sm:$0xf] %v790_v31 }
 0x121   :  { %794 = vst.sshfl [vmem:[#allocation1] sm:$0xff pattern:$0x73625140] %v776_v15 }
 0x122   :  { %795 = vst.sshfl [vmem:[#allocation1 + $0x8] sm:$0xff pattern:$0x73625140] %v777_v18 }
 0x129   :  { %v797_v32 = vld [vmem:[#allocation1 + $0x3] ss:$4 sm:$0xff] }
 0x12a   :  { %800 = vst [vmem:[#allocation2 + $0x1c] sm:$0xf] %v797_v32 }
 0x12b LB: > { %v1369_v35 = vor.u32 %v2225_v29, %v2215_v27  ;;  %v1373_v36 = vor.u32 %v2210_v26, %v2220_v28  ;;  %v821_v37 = vpack.c.bf16 %v1534_v34, %v1534_v34  ;;  %v1361_v38 = vor.u32 %v2205_v25, %v2195_v23  ;;  %s1540_s2 = smov 64   ;;  %s1485_s18 = sshll.u32 %s1538_s17, 2  ;;  %s1538_s17 = sphi %s2231_s17, %s814_s17   ;;  %v1534_v34 = vphi %v2229_v34, %v926_v34   ;;  %v1530_v33 = vphi %v2227_v33, %v924_v33  }
 0x12c   : > { %v1365_v56 = vor.u32 %v2190_v20, %v2200_v24  ;;  %v1353_v21 = vor.u32 %v2185_v19, %v2173_v16  ;;  %v1357_v39 = vor.u32 %v2165_v14, %v2178_v17  ;;  %v1345_v3 = vor.u32 %v2160_v9, %v2150_v11  ;;  %s819_s19 = scalar_lea.vmem [#allocation2], %s1485_s18  ;;  %s938_s22 = scalar_lea.vmem %s2352_s4, %s1538_s17 }
 0x12d   : > { %873 = vmatpush.bf16.msra.mxu0 %v1369_v35  ;;  %886 = vmatpush.bf16.msra.mxu1 %v1373_v36  ;;  %v1349_v40 = vor.u32 %v2145_v10, %v2155_v12  ;;  %vm865_vm5 = vcmask 523264   ;;  %vm930_vm6 = vcmask 1040384   ;;  %vm939_vm7 = vcmask 516096   ;;  %s814_s17 = sadd.s32 1, %s1538_s17  }
 0x12e   : > { %823 = vrot.lane.b32.xlu0 %v821_v37, %s1540_s2  ;;  %p811_p0 = scmp.ge.s32.totalorder %s814_s17, 8  }
 0x12f   :  { %v1541_v4 = vmov (%p811_p0), 0  }
 0x130   :  { %v944_v5 = vsel (%p811_p0), %vm54_vm0, 1, %v1541_v4  ;;  %v948_v6 = vunpack.c.l.b16 (%p811_p0), %v1541_v4  ;;  %v949_v7 = vunpack.c.h.b16 (%p811_p0), %v1541_v4 }
 0x131   : > { %874 = vmatpush.bf16.msra.mxu0 %v1361_v38  ;;  %887 = vmatpush.bf16.msra.mxu1 %v1365_v56  ;;  %v820_v44 = vld [vmem:[%s819_s19] sm:$0xf]  ;;  %v1377_v13 = vunpack.i.l.s16 (%p811_p0), %v944_v5 }
 0x133   :  { %vm950_vm8 = vcmp.ne.s32.totalorder (%p811_p0), %v1377_v13, %v948_v6  ;;  %vm951_vm9 = vcmp.ne.s32.totalorder (%p811_p0), %v1377_v13, %v949_v7 }
 0x134   :  { %vm2287_vm10 = vmpackc.low (%p811_p0), %vm951_vm9, %vm950_vm8 }
 0x135   : > { %875 = vmatpush.bf16.msra.mxu0 %v1353_v21  ;;  %888 = vmatpush.bf16.msra.mxu1 %v1357_v39 }
 0x139   : > { %876 = vmatpush.bf16.msra.mxu0 %v1345_v3  ;;  %889 = vmatpush.bf16.msra.mxu1 %v1349_v40 }
 0x1a0   : > { %v824_v41 = vpop.permute.xlu0 %823 }
 0x1a1   : > { %1374 = vmatmul.msk.bf16.vlgmr.msra.gmra.mxu0 %vm865_vm5, %v824_v41  ;;  %1375 = vmatmul.msk.bf16.vlgmr.msra.gmra.mxu1 %vm865_vm5, %v824_v41 }
 0x21e   : > { %v878_v42 = vpop.f32.mrf.mxu0  ;;  %v891_v43 = vpop.f32.mrf.mxu1 }
 0x21f   : > { %v897_v45 = vrot.slane %v891_v43, 6 }
 0x221   : > { %v898_v46 = vsel %vm724_vm4, %v878_v42, %v897_v45 }
 0x222   : > { %v900_v47 = vadd.f32 %v898_v46, %v820_v44 }
 0x224   : > { %1512 = vtanh.f32 %v900_v47 }
 0x226   : > { %v880_v48 = vpop.f32.mrf.mxu0  ;;  %v893_v49 = vpop.f32.mrf.mxu1 }
 0x22a   : > { %v1513_v50 = vpop.eup %1512 }
 0x22b   : > { %905 = vst [vmem:[#allocation1] ss:$4 sm:$0xff] %v1513_v50  ;;  %v902_v51 = vmul.f32 0.5, %v1513_v50 }
 0x22d   : > { %v903_v52 = vadd.f32 0.5, %v902_v51 }
 0x232   : > { %v907_v53 = vld.sshfl [vmem:[#allocation1 + $0x8] sm:$0xff pattern:$0x73625140] }
 0x233   : > { %911 = vst [vmem:[#allocation1] ss:$4 sm:$0xff] %v903_v52 }
 0x23a   : > { %v912_v54 = vld.sshfl [vmem:[#allocation1] sm:$0xff pattern:$0x73625140]  ;;  %v913_v55 = vld.sshfl [vmem:[#allocation1 + $0x8] sm:$0xff pattern:$0x73625140] }
 0x23b   : > { %v917_v57 = vsel %vm51_vm1, %v907_v53, %v913_v55  ;;  %v918_v59 = vmul.f32 %v1530_v33, %v912_v54 }
 0x23c   : > { %v919_v58 = vmul.f32 %v917_v57, %v912_v54 }
 0x23e   : > { %921 = vrot.lane.b32.xlu0 %v919_v58, %s1540_s2 }
 0x2b0   : > { %v922_v60 = vpop.permute.xlu0 %921 }
 0x2b1   : > { %v924_v33 = vadd.f32 %v922_v60, %v918_v59  }
 0x2b3   : > { %1514 = vtanh.f32 %v924_v33 }
 0x2b9   : > { %v1515_v61 = vpop.eup %1514 }
 0x2ba   : > { %v926_v34 = vmul.f32 %v1515_v61, %v917_v57  }
 0x2bc   : > { %v927_v62 = vpack.c.bf16 %v926_v34, %v926_v34 }
 0x2be   : > { %v929_v63 = vrot.slane %v927_v62, 3 }
 0x2c0   : > { %v933_v0 = vsel %vm930_vm6, %v927_v62, %v929_v63 }
 0x2c1   : > { %935 = vrot.lane.b32.xlu1 %v933_v0, %s1540_s2 }
 0x330   :  { %813 = sbr.rel (!%p811_p0) target bundleno = 299 (0x12b), region = 65 }
 0x333   : > { %v936_v1 = vpop.permute.xlu1 %935 }
 0x334   : > { %940 = vst.msk [vmem:[%s938_s22] sm:$0x1] %vm939_vm7, %v936_v1 }
 0x33b   :  { %v941_v8 = vld [vmem:[%s2352_s4] sm:$0x1]  ;;  %v1376_v15 = vld [vmem:[%s2352_s4 + $0x7] sm:$0x1]  ;;  %v1380_v18 = vld [vmem:[%s2352_s4 + $0x1] sm:$0x1] }
 0x33c   :  { %v1381_v2 = vld [vmem:[%s2352_s4 + $0x6] sm:$0x1]  ;;  %v1384_v10 = vld [vmem:[%s2352_s4 + $0x2] sm:$0x1]  ;;  %v1385_v11 = vld [vmem:[%s2352_s4 + $0x5] sm:$0x1]  ;;  %v953_v12 = vsel %vm2287_vm10, %v941_v8, %v1376_v15  ;;  %v956_v9 = vsel %vm2287_vm10, %v1376_v15, %v941_v8 }
 0x33d   :  { %v962_v14 = vsel %vm2287_vm10, %v1380_v18, %v1381_v2  ;;  %955 = vst.msk [vmem:[%s2352_s4] sm:$0x1] %vm939_vm7, %v953_v12  ;;  %v964_v16 = vsel %vm2287_vm10, %v1381_v2, %v1380_v18  ;;  %v1388_v17 = vld [vmem:[%s2352_s4 + $0x3] sm:$0x1]  ;;  %v1389_v19 = vld [vmem:[%s2352_s4 + $0x4] sm:$0x1]  ;;  %v970_v20 = vsel %vm2287_vm10, %v1384_v10, %v1385_v11  ;;  %v972_v23 = vsel %vm2287_vm10, %v1385_v11, %v1384_v10 }
 0x33e   :  { %1379 = vst.msk [vmem:[%s2352_s4 + $0x7] sm:$0x1] %vm939_vm7, %v956_v9  ;;  %v978_v24 = vsel %vm2287_vm10, %v1388_v17, %v1389_v19  ;;  %v980_v25 = vsel %vm2287_vm10, %v1389_v19, %v1388_v17 }
 0x33f   :  { %1382 = vst.msk [vmem:[%s2352_s4 + $0x1] sm:$0x1] %vm939_vm7, %v962_v14 }
 0x340   :  { %1383 = vst.msk [vmem:[%s2352_s4 + $0x6] sm:$0x1] %vm939_vm7, %v964_v16 }
 0x341   :  { %1386 = vst.msk [vmem:[%s2352_s4 + $0x2] sm:$0x1] %vm939_vm7, %v970_v20 }
 0x342   :  { %1387 = vst.msk [vmem:[%s2352_s4 + $0x5] sm:$0x1] %vm939_vm7, %v972_v23 }
 0x343   :  { %1390 = vst.msk [vmem:[%s2352_s4 + $0x3] sm:$0x1] %vm939_vm7, %v978_v24 }
 0x344   :  { %1391 = vst.msk [vmem:[%s2352_s4 + $0x4] sm:$0x1] %vm939_vm7, %v980_v25 }

</bundles_post_ra>
